<compile_context>
chip_gen: v6e
topology: v6e:2x2x1
jax: 0.10.0
libtpu: 0.0.40
codegen_flags: <defaults>
</compile_context>

<pallas_src>
import functools
import math

import jax
import jax.numpy as jnp
from jax.experimental import pallas as pl
from jax.experimental.pallas import tpu as pltpu

# ---------------- scaled-down config (same structure as KcELECTRA-base) -----
VOCAB = 512          # stands in for resize_token_embeddings(54349)
HIDDEN = 128         # stands in for 768
N_HEADS = 4
HEAD_DIM = HIDDEN // N_HEADS
INTERMEDIATE = 256   # stands in for 3072
N_LAYERS = 2         # stands in for 12
DENSE_DIM = 64       # stands in for the head's 768 -> 256 dense
DENSE_PAD = 128      # lane-dense padded dense width
NUM_LABELS = 3
HEAD_PAD = 128       # lane-dense padded width for the logits slab
MAX_POS = 64
LN_EPS = 1e-12

# Per-generation scoped-VMEM ceiling (defaults are only 16/32 MiB and the
# full-scale fused layer would exceed them).
try:
    _VMEM_LIMIT = min(int(pltpu.get_tpu_info().vmem_capacity_bytes * 0.85),
                      100 * 1024 * 1024)
except Exception:  # pragma: no cover - conservative fallback
    _VMEM_LIMIT = 64 * 1024 * 1024


def _gelu(x):
    # TODO(synk): F.gelu defaults to exact erf-GELU; tanh approximation used
    # because erf is not reliably lowered by Mosaic (~1e-3 deviation).
    return jax.nn.gelu(x, approximate=True)


def _layernorm(x, g, b):
    mu = jnp.mean(x, axis=-1, keepdims=True)
    d = x - mu
    var = jnp.mean(d * d, axis=-1, keepdims=True)
    return d * jax.lax.rsqrt(var + LN_EPS) * g + b


# --------------------- fused encoder + head kernel --------------------------
def _encoder_head_kernel(x_ref, mask_ref,
                         wqkv_ref, bqkv_ref, wo_ref, bo_ref,
                         ln1g_ref, ln1b_ref,
                         wi_ref, bi_ref, wout_ref, bout_ref,
                         ln2g_ref, ln2b_ref,
                         hw1_ref, hb1_ref, hw2_ref, hb2_ref,
                         o_ref, acc_ref):
    """Grid = (batch, layer). One encoder layer per step; residual stream stays
    resident in the VMEM scratch `acc_ref`; logits written only at the last layer."""
    b = pl.program_id(0)
    layer = pl.program_id(1)
    n_layers = pl.num_programs(1)

    # Layer 0 of each batch tile: seed the resident residual stream with the
    # (already LayerNorm'ed, in XLA) embeddings.
    @pl.when(layer == 0)
    def _():
        acc_ref[...] = x_ref[...]

    h = acc_ref[...]                                   # (S, H) f32 residual stream

    # ---- fused QKV projection (bf16 MXU, f32 accumulate); single bf16 cast ----
    qkv = jnp.dot(h.astype(jnp.bfloat16), wqkv_ref[...],
                  preferred_element_type=jnp.float32) + bqkv_ref[...]
    qkv = qkv.astype(jnp.bfloat16)                     # (S, 3H)

    # ---- heads batched along a leading axis: one QK^T contraction, one
    #      softmax, one PV contraction (no per-head unroll) ----
    def split_heads(base):
        return jnp.stack(
            [qkv[:, base + i * HEAD_DIM: base + (i + 1) * HEAD_DIM]
             for i in range(N_HEADS)], axis=0)         # (nh, S, d) bf16
    q = split_heads(0)
    k = split_heads(HIDDEN)
    v = split_heads(2 * HIDDEN)

    mask = mask_ref[pl.ds(b, 1), :]                    # (1, S) additive mask
    s = jnp.einsum("hqd,hkd->hqk", q, k,
                   preferred_element_type=jnp.float32)  # (nh, S, S)
    s = s * (1.0 / math.sqrt(HEAD_DIM)) + mask[None]
    s = s - jnp.max(s, axis=-1, keepdims=True)
    p = jnp.exp(s)
    # approx reciprocal runs on the EUP slot; swap to exact divide for strict parity.
    p = p * pl.reciprocal(jnp.sum(p, axis=-1, keepdims=True), approx=True)
    ctx = jnp.einsum("hqk,hkd->hqd", p.astype(jnp.bfloat16), v,
                     preferred_element_type=jnp.float32)  # (nh, S, d)
    ctx2d = jnp.concatenate([ctx[i] for i in range(N_HEADS)], axis=-1)  # (S, H)

    # ---- attention output projection + residual + LN ----
    attn = jnp.dot(ctx2d.astype(jnp.bfloat16), wo_ref[...],
                   preferred_element_type=jnp.float32) + bo_ref[...]
    h1 = _layernorm(attn + h, ln1g_ref[...], ln1b_ref[...])

    # ---- FFN (up + GELU + down) + residual + LN ----
    f = jnp.dot(h1.astype(jnp.bfloat16), wi_ref[...],
                preferred_element_type=jnp.float32) + bi_ref[...]
    f = _gelu(f)
    f = jnp.dot(f.astype(jnp.bfloat16), wout_ref[...],
                preferred_element_type=jnp.float32) + bout_ref[...]
    h2 = _layernorm(f + h1, ln2g_ref[...], ln2b_ref[...])
    acc_ref[...] = h2

    # ---- last layer: fused classification head (dropouts identity in eval) ----
    @pl.when(layer == n_layers - 1)
    def _():
        cls = h2[0:1, :]                               # (1, H) CLS token
        z = jnp.dot(cls.astype(jnp.bfloat16), hw1_ref[...],
                    preferred_element_type=jnp.float32) + hb1_ref[...]
        z = _gelu(z)
        y = jnp.dot(z.astype(jnp.bfloat16), hw2_ref[...],
                    preferred_element_type=jnp.float32) + hb2_ref[...]
        # Output block is (8, HEAD_PAD) so the last two dims stay (8,128)-aligned;
        # the wrapper reads row 0.
        o_ref[...] = jnp.broadcast_to(y, o_ref.shape).astype(o_ref.dtype)


def encoder_with_head(x, mask_add, params):
    """x: (B,S,H) LayerNorm'ed embeddings; mask_add: (B,S) additive mask.
    Returns (B, 8, HEAD_PAD) logits slab (row 0 valid)."""
    B, S, _ = x.shape
    n_layers = params["wqkv"].shape[0]

    def per_layer(arr):
        nd = arr.ndim
        return pl.BlockSpec((None,) + tuple(arr.shape[1:]),
                            lambda b, l, _nd=nd: (l,) + (0,) * (_nd - 1))

    def shared(arr):
        nd = arr.ndim
        return pl.BlockSpec(tuple(arr.shape),
                            lambda b, l, _nd=nd: (0,) * _nd)

    return pl.pallas_call(
        _encoder_head_kernel,
        out_shape=jax.ShapeDtypeStruct((B, 8, HEAD_PAD), jnp.float32),
        grid=(B, n_layers),
        in_specs=[
            # per-batch embeddings (read only at layer 0 of each batch tile)
            # TODO(synk): pipeline_mode=pl.Buffered(1) here at real scale.
            pl.BlockSpec((None, S, HIDDEN), lambda b, l: (b, 0, 0)),
            # full (B,S) additive mask, fetched once
            pl.BlockSpec((B, S), lambda b, l: (0, 0)),
            per_layer(params["wqkv"]), per_layer(params["bqkv"]),
            per_layer(params["wo"]), per_layer(params["bo"]),
            per_layer(params["ln1_g"]), per_layer(params["ln1_b"]),
            per_layer(params["wi"]), per_layer(params["bi"]),
            per_layer(params["wout"]), per_layer(params["bout"]),
            per_layer(params["ln2_g"]), per_layer(params["ln2_b"]),
            shared(params["head_w1"]), shared(params["head_b1"]),
            shared(params["head_w2"]), shared(params["head_b2"]),
        ],
        out_specs=pl.BlockSpec((None, 8, HEAD_PAD), lambda b, l: (b, 0, 0)),
        scratch_shapes=[pltpu.VMEM((S, HIDDEN), jnp.float32)],
        compiler_params=pltpu.CompilerParams(
            dimension_semantics=("parallel", "arbitrary"),
            vmem_limit_bytes=_VMEM_LIMIT),
    )(x, mask_add,
      params["wqkv"], params["bqkv"], params["wo"], params["bo"],
      params["ln1_g"], params["ln1_b"],
      params["wi"], params["bi"], params["wout"], params["bout"],
      params["ln2_g"], params["ln2_b"],
      params["head_w1"], params["head_b1"],
      params["head_w2"], params["head_b2"])


# ----------------------------- parameter init -------------------------------
def init_params(key):
    ks = jax.random.split(key, 10)

    def nrm(k, shape, std=0.02, dtype=jnp.float32):
        return (std * jax.random.normal(k, shape)).astype(dtype)

    L = N_LAYERS
    # Head weights, zero-padded lane-dense: dense 64->128, out_proj 3->128.
    w1 = nrm(ks[7], (HIDDEN, DENSE_DIM))
    w1 = jnp.pad(w1, ((0, 0), (0, DENSE_PAD - DENSE_DIM)))
    w2 = nrm(ks[8], (DENSE_DIM, NUM_LABELS))
    w2 = jnp.pad(w2, ((0, DENSE_PAD - DENSE_DIM), (0, HEAD_PAD - NUM_LABELS)))
    return {
        # embeddings (f32; gathers + embedding LayerNorm happen in XLA)
        "word_emb": nrm(ks[0], (VOCAB, HIDDEN)),
        "pos_emb": nrm(ks[1], (MAX_POS, HIDDEN)),
        "type_emb": nrm(ks[2], (2, HIDDEN)),
        "emb_ln_g": jnp.ones((1, HIDDEN), jnp.float32),
        "emb_ln_b": jnp.zeros((1, HIDDEN), jnp.float32),
        # encoder layers, stacked over the layer axis; matmul weights bf16
        # (MXU-native), biases / LN params f32.
        "wqkv": nrm(ks[3], (L, HIDDEN, 3 * HIDDEN), dtype=jnp.bfloat16),
        "bqkv": jnp.zeros((L, 1, 3 * HIDDEN), jnp.float32),
        "wo":   nrm(ks[4], (L, HIDDEN, HIDDEN), dtype=jnp.bfloat16),
        "bo":   jnp.zeros((L, 1, HIDDEN), jnp.float32),
        "ln1_g": jnp.ones((L, 1, HIDDEN), jnp.float32),
        "ln1_b": jnp.zeros((L, 1, HIDDEN), jnp.float32),
        "wi":   nrm(ks[5], (L, HIDDEN, INTERMEDIATE), dtype=jnp.bfloat16),
        "bi":   jnp.zeros((L, 1, INTERMEDIATE), jnp.float32),
        "wout": nrm(ks[6], (L, INTERMEDIATE, HIDDEN), dtype=jnp.bfloat16),
        "bout": jnp.zeros((L, 1, HIDDEN), jnp.float32),
        "ln2_g": jnp.ones((L, 1, HIDDEN), jnp.float32),
        "ln2_b": jnp.zeros((L, 1, HIDDEN), jnp.float32),
        # classification head (dense 768->256->num_labels at full scale)
        "head_w1": w1.astype(jnp.bfloat16),
        "head_b1": jnp.zeros((1, DENSE_PAD), jnp.float32),
        "head_w2": w2.astype(jnp.bfloat16),
        "head_b2": jnp.zeros((1, HEAD_PAD), jnp.float32),
    }


# ------------------------------ forward pass ---------------------------------
def kcelectra_modified_forward(params, x1, x2):
    """x1: int32 token ids (B, S); x2: attention mask (B, S) of 0/1."""
    B, S = x1.shape

    # --- embeddings (gather is XLA glue); token_type_ids default to zeros ---
    emb = (params["word_emb"][x1]
           + params["pos_emb"][:S][None, :, :]
           + params["type_emb"][0][None, None, :])          # (B, S, H)

    # --- embedding LayerNorm in XLA so the kernel carries no layer-0-only refs
    mu = jnp.mean(emb, axis=-1, keepdims=True)
    var = jnp.mean((emb - mu) ** 2, axis=-1, keepdims=True)
    x = ((emb - mu) * jax.lax.rsqrt(var + LN_EPS)
         * params["emb_ln_g"] + params["emb_ln_b"])          # (B, S, H) f32

    # --- additive attention mask (B, S); broadcast over heads in-kernel ---
    mask_add = (1.0 - x2.astype(jnp.float32)) * (-1e9)

    # --- fused encoder (N layers) + classification head in one pallas_call ---
    logits_pad = encoder_with_head(x, mask_add, params)      # (B, 8, HEAD_PAD)
    return logits_pad[:, 0, :NUM_LABELS]                     # (B, num_labels)


# ---------------------------------- main -------------------------------------
if __name__ == "__main__":
    B, S = 2, 8
    root = jax.random.PRNGKey(0)
    k_param, k_ids = jax.random.split(root)

    params = init_params(k_param)
    x1 = jax.random.randint(k_ids, (B, S), 0, VOCAB, dtype=jnp.int32)
    # attention mask: second sequence has 2 padding tokens
    x2 = jnp.array([[1, 1, 1, 1, 1, 1, 1, 1],
                    [1, 1, 1, 1, 1, 1, 0, 0]], dtype=jnp.int32)

    fwd = jax.jit(functools.partial(kcelectra_modified_forward, params))
    out = fwd(x1, x2)
    jax.block_until_ready(out)

    assert out.shape == (B, NUM_LABELS) and out.dtype == jnp.float32
    print("KERNEL_OK")
</pallas_src>

<mosaic_0001>
module attributes {stable_mosaic.version = 11 : i64} {
  func.func @_encoder_head_kernel(%arg0: i32, %arg1: i32, %arg2: memref<1x8x128xf32, #tpu.memory_space<vmem>>, %arg3: memref<2x8xf32, #tpu.memory_space<vmem>>, %arg4: memref<1x128x384xbf16, #tpu.memory_space<vmem>>, %arg5: memref<1x1x384xf32, #tpu.memory_space<vmem>>, %arg6: memref<1x128x128xbf16, #tpu.memory_space<vmem>>, %arg7: memref<1x1x128xf32, #tpu.memory_space<vmem>>, %arg8: memref<1x1x128xf32, #tpu.memory_space<vmem>>, %arg9: memref<1x1x128xf32, #tpu.memory_space<vmem>>, %arg10: memref<1x128x256xbf16, #tpu.memory_space<vmem>>, %arg11: memref<1x1x256xf32, #tpu.memory_space<vmem>>, %arg12: memref<1x256x128xbf16, #tpu.memory_space<vmem>>, %arg13: memref<1x1x128xf32, #tpu.memory_space<vmem>>, %arg14: memref<1x1x128xf32, #tpu.memory_space<vmem>>, %arg15: memref<1x1x128xf32, #tpu.memory_space<vmem>>, %arg16: memref<128x128xbf16, #tpu.memory_space<vmem>>, %arg17: memref<1x128xf32, #tpu.memory_space<vmem>>, %arg18: memref<128x128xbf16, #tpu.memory_space<vmem>>, %arg19: memref<1x128xf32, #tpu.memory_space<vmem>>, %arg20: memref<1x8x128xf32, #tpu.memory_space<vmem>>, %arg21: memref<8x128xf32, #tpu.memory_space<vmem>>) attributes {dimension_semantics = [#tpu.dimension_semantics<parallel>, #tpu.dimension_semantics<arbitrary>], iteration_bounds = array<i64: 2, 2>, scalar_prefetch = 0 : i64, scratch_operands = 1 : i64, tpu.core_type = #tpu.core_type<tc>, window_params = [{transform_indices = @transform_0, window_bounds = array<i64: 1, 8, 128>}, {pipeline_mode = #tpu.pipeline_mode<synchronous>, transform_indices = @transform_1, window_bounds = array<i64: 2, 8>}, {transform_indices = @transform_2, window_bounds = array<i64: 1, 128, 384>}, {transform_indices = @transform_3, window_bounds = array<i64: 1, 1, 384>}, {transform_indices = @transform_4, window_bounds = array<i64: 1, 128, 128>}, {transform_indices = @transform_5, window_bounds = array<i64: 1, 1, 128>}, {transform_indices = @transform_6, window_bounds = array<i64: 1, 1, 128>}, {transform_indices = @transform_7, window_bounds = array<i64: 1, 1, 128>}, {transform_indices = @transform_8, window_bounds = array<i64: 1, 128, 256>}, {transform_indices = @transform_9, window_bounds = array<i64: 1, 1, 256>}, {transform_indices = @transform_10, window_bounds = array<i64: 1, 256, 128>}, {transform_indices = @transform_11, window_bounds = array<i64: 1, 1, 128>}, {transform_indices = @transform_12, window_bounds = array<i64: 1, 1, 128>}, {transform_indices = @transform_13, window_bounds = array<i64: 1, 1, 128>}, {pipeline_mode = #tpu.pipeline_mode<synchronous>, transform_indices = @transform_14, window_bounds = array<i64: 128, 128>}, {pipeline_mode = #tpu.pipeline_mode<synchronous>, transform_indices = @transform_15, window_bounds = array<i64: 1, 128>}, {pipeline_mode = #tpu.pipeline_mode<synchronous>, transform_indices = @transform_16, window_bounds = array<i64: 128, 128>}, {pipeline_mode = #tpu.pipeline_mode<synchronous>, transform_indices = @transform_17, window_bounds = array<i64: 1, 128>}, {transform_indices = @transform_18, window_bounds = array<i64: 1, 8, 128>}]} {
    %c0_i32 = arith.constant 0 : i32
    %0 = arith.cmpi eq, %arg1, %c0_i32 : i32
    %1 = arith.extui %0 : i1 to i32
    %c0_i32_0 = arith.constant 0 : i32
    %2 = arith.cmpi ne, %1, %c0_i32_0 : i32
    scf.if %2 {
      %c0_64 = arith.constant 0 : index
      %c0_65 = arith.constant 0 : index
      %c0_66 = arith.constant 0 : index
      %160 = vector.load %arg2[%c0_64, %c0_65, %c0_66] : memref<1x8x128xf32, #tpu.memory_space<vmem>>, vector<1x8x128xf32>
      %161 = vector.shape_cast %160 : vector<1x8x128xf32> to vector<8x128xf32>
      %c0_67 = arith.constant 0 : index
      %c0_68 = arith.constant 0 : index
      %162 = vector.load %arg21[%c0_67, %c0_68] : memref<8x128xf32, #tpu.memory_space<vmem>>, vector<8x128xf32>
      tpu.vector_store %arg21[%c0_67, %c0_68], %161 {strides = array<i32>} : memref<8x128xf32, #tpu.memory_space<vmem>>, vector<8x128xf32>,
    } else {
    }
    %c0 = arith.constant 0 : index
    %c0_1 = arith.constant 0 : index
    %3 = vector.load %arg21[%c0, %c0_1] : memref<8x128xf32, #tpu.memory_space<vmem>>, vector<8x128xf32>
    %4 = arith.truncf %3 : vector<8x128xf32> to vector<8x128xbf16>
    %c0_2 = arith.constant 0 : index
    %c0_3 = arith.constant 0 : index
    %c0_4 = arith.constant 0 : index
    %5 = vector.load %arg4[%c0_2, %c0_3, %c0_4] : memref<1x128x384xbf16, #tpu.memory_space<vmem>>, vector<1x128x384xbf16>
    %6 = vector.shape_cast %5 : vector<1x128x384xbf16> to vector<128x384xbf16>
    %cst = arith.constant dense<0.000000e+00> : vector<8x384xf32>
    %7 = tpu.matmul %4, %6, %cst {dimension_numbers = #tpu.dot_dimension_numbers<[1], [0], [0], [1], [0, 0, 1, 1], [], []>} : vector<8x128xbf16>, vector<128x384xbf16>, vector<8x384xf32> -> vector<8x384xf32>
    %c0_5 = arith.constant 0 : index
    %c0_6 = arith.constant 0 : index
    %c0_7 = arith.constant 0 : index
    %8 = vector.load %arg5[%c0_5, %c0_6, %c0_7] : memref<1x1x384xf32, #tpu.memory_space<vmem>>, vector<1x1x384xf32>
    %9 = vector.shape_cast %8 : vector<1x1x384xf32> to vector<1x384xf32>
    %10 = vector.broadcast %9 : vector<1x384xf32> to vector<8x384xf32>
    %11 = arith.addf %7, %10 : vector<8x384xf32>
    %12 = arith.truncf %11 : vector<8x384xf32> to vector<8x384xbf16>
    %13 = vector.extract_strided_slice %12 {offsets = [0, 0], sizes = [8, 32], strides = [1, 1]} : vector<8x384xbf16> to vector<8x32xbf16>
    %14 = vector.extract_strided_slice %12 {offsets = [0, 32], sizes = [8, 32], strides = [1, 1]} : vector<8x384xbf16> to vector<8x32xbf16>
    %15 = vector.extract_strided_slice %12 {offsets = [0, 64], sizes = [8, 32], strides = [1, 1]} : vector<8x384xbf16> to vector<8x32xbf16>
    %16 = vector.extract_strided_slice %12 {offsets = [0, 96], sizes = [8, 32], strides = [1, 1]} : vector<8x384xbf16> to vector<8x32xbf16>
    %17 = vector.shape_cast %13 : vector<8x32xbf16> to vector<1x8x32xbf16>
    %18 = vector.shape_cast %14 : vector<8x32xbf16> to vector<1x8x32xbf16>
    %19 = vector.shape_cast %15 : vector<8x32xbf16> to vector<1x8x32xbf16>
    %20 = vector.shape_cast %16 : vector<8x32xbf16> to vector<1x8x32xbf16>
    %21 = tpu.concatenate %17, %18, %19, %20 in 0 : vector<1x8x32xbf16>, vector<1x8x32xbf16>, vector<1x8x32xbf16>, vector<1x8x32xbf16> -> vector<4x8x32xbf16>
    %22 = vector.extract_strided_slice %12 {offsets = [0, 128], sizes = [8, 32], strides = [1, 1]} : vector<8x384xbf16> to vector<8x32xbf16>
    %23 = vector.extract_strided_slice %12 {offsets = [0, 160], sizes = [8, 32], strides = [1, 1]} : vector<8x384xbf16> to vector<8x32xbf16>
    %24 = vector.extract_strided_slice %12 {offsets = [0, 192], sizes = [8, 32], strides = [1, 1]} : vector<8x384xbf16> to vector<8x32xbf16>
    %25 = vector.extract_strided_slice %12 {offsets = [0, 224], sizes = [8, 32], strides = [1, 1]} : vector<8x384xbf16> to vector<8x32xbf16>
    %26 = vector.shape_cast %22 : vector<8x32xbf16> to vector<1x8x32xbf16>
    %27 = vector.shape_cast %23 : vector<8x32xbf16> to vector<1x8x32xbf16>
    %28 = vector.shape_cast %24 : vector<8x32xbf16> to vector<1x8x32xbf16>
    %29 = vector.shape_cast %25 : vector<8x32xbf16> to vector<1x8x32xbf16>
    %30 = tpu.concatenate %26, %27, %28, %29 in 0 : vector<1x8x32xbf16>, vector<1x8x32xbf16>, vector<1x8x32xbf16>, vector<1x8x32xbf16> -> vector<4x8x32xbf16>
    %31 = vector.extract_strided_slice %12 {offsets = [0, 256], sizes = [8, 32], strides = [1, 1]} : vector<8x384xbf16> to vector<8x32xbf16>
    %32 = vector.extract_strided_slice %12 {offsets = [0, 288], sizes = [8, 32], strides = [1, 1]} : vector<8x384xbf16> to vector<8x32xbf16>
    %33 = vector.extract_strided_slice %12 {offsets = [0, 320], sizes = [8, 32], strides = [1, 1]} : vector<8x384xbf16> to vector<8x32xbf16>
    %34 = vector.extract_strided_slice %12 {offsets = [0, 352], sizes = [8, 32], strides = [1, 1]} : vector<8x384xbf16> to vector<8x32xbf16>
    %35 = vector.shape_cast %31 : vector<8x32xbf16> to vector<1x8x32xbf16>
    %36 = vector.shape_cast %32 : vector<8x32xbf16> to vector<1x8x32xbf16>
    %37 = vector.shape_cast %33 : vector<8x32xbf16> to vector<1x8x32xbf16>
    %38 = vector.shape_cast %34 : vector<8x32xbf16> to vector<1x8x32xbf16>
    %39 = tpu.concatenate %35, %36, %37, %38 in 0 : vector<1x8x32xbf16>, vector<1x8x32xbf16>, vector<1x8x32xbf16>, vector<1x8x32xbf16> -> vector<4x8x32xbf16>
    %40 = arith.index_cast %arg0 : i32 to index
    %c0_8 = arith.constant 0 : index
    %41 = vector.load %arg3[%40, %c0_8] : memref<2x8xf32, #tpu.memory_space<vmem>>, vector<1x8xf32>
    "tpu.trace_start"() <{level = 10 : i32, message = "hqd,hkd->hqk"}> : () -> ()
    %cst_9 = arith.constant dense<0.000000e+00> : vector<4x8x8xf32>
    %42 = tpu.matmul %21, %30, %cst_9 {dimension_numbers = #tpu.dot_dimension_numbers<[2], [2], [1], [1], [0, 0, 0, 1, 1, 1], [0], [0]>} : vector<4x8x32xbf16>, vector<4x8x32xbf16>, vector<4x8x8xf32> -> vector<4x8x8xf32>
    "tpu.trace_stop"() : () -> ()
    %cst_10 = arith.constant 0.176776692 : f32
    %43 = vector.broadcast %cst_10 : f32 to vector<4x8x8xf32>
    %44 = arith.mulf %42, %43 : vector<4x8x8xf32>
    %45 = vector.shape_cast %41 : vector<1x8xf32> to vector<1x1x8xf32>
    %46 = vector.broadcast %45 : vector<1x1x8xf32> to vector<4x8x8xf32>
    %47 = arith.addf %44, %46 : vector<4x8x8xf32>
    %cst_11 = arith.constant dense<0xFF800000> : vector<4x8xf32>
    %48 = vector.multi_reduction <maximumf>, %47, %cst_11 [2] : vector<4x8x8xf32> to vector<4x8xf32>
    %49 = vector.shape_cast %48 : vector<4x8xf32> to vector<4x8x1xf32>
    %50 = vector.broadcast %49 : vector<4x8x1xf32> to vector<4x8x8xf32>
    %51 = arith.subf %47, %50 : vector<4x8x8xf32>
    %52 = math.exp %51 : vector<4x8x8xf32>
    %cst_12 = arith.constant dense<0.000000e+00> : vector<4x8xf32>
    %53 = vector.multi_reduction <add>, %52, %cst_12 [2] : vector<4x8x8xf32> to vector<4x8xf32>
    %54 = vector.shape_cast %53 : vector<4x8xf32> to vector<4x8x1xf32>
    %55 = tpu.reciprocal %54 {approx = true} : vector<4x8x1xf32> -> vector<4x8x1xf32>
    %56 = vector.broadcast %55 : vector<4x8x1xf32> to vector<4x8x8xf32>
    %57 = arith.mulf %52, %56 : vector<4x8x8xf32>
    %58 = arith.truncf %57 : vector<4x8x8xf32> to vector<4x8x8xbf16>
    "tpu.trace_start"() <{level = 10 : i32, message = "hqk,hkd->hqd"}> : () -> ()
    %cst_13 = arith.constant dense<0.000000e+00> : vector<4x8x32xf32>
    %59 = tpu.matmul %58, %39, %cst_13 {dimension_numbers = #tpu.dot_dimension_numbers<[2], [1], [1], [2], [0, 0, 0, 1, 1, 2], [0], [0]>} : vector<4x8x8xbf16>, vector<4x8x32xbf16>, vector<4x8x32xf32> -> vector<4x8x32xf32>
    "tpu.trace_stop"() : () -> ()
    %60 = vector.extract_strided_slice %59 {offsets = [0, 0, 0], sizes = [1, 8, 32], strides = [1, 1, 1]} : vector<4x8x32xf32> to vector<1x8x32xf32>
    %61 = vector.shape_cast %60 : vector<1x8x32xf32> to vector<8x32xf32>
    %62 = vector.extract_strided_slice %59 {offsets = [1, 0, 0], sizes = [1, 8, 32], strides = [1, 1, 1]} : vector<4x8x32xf32> to vector<1x8x32xf32>
    %63 = vector.shape_cast %62 : vector<1x8x32xf32> to vector<8x32xf32>
    %64 = vector.extract_strided_slice %59 {offsets = [2, 0, 0], sizes = [1, 8, 32], strides = [1, 1, 1]} : vector<4x8x32xf32> to vector<1x8x32xf32>
    %65 = vector.shape_cast %64 : vector<1x8x32xf32> to vector<8x32xf32>
    %66 = vector.extract_strided_slice %59 {offsets = [3, 0, 0], sizes = [1, 8, 32], strides = [1, 1, 1]} : vector<4x8x32xf32> to vector<1x8x32xf32>
    %67 = vector.shape_cast %66 : vector<1x8x32xf32> to vector<8x32xf32>
    %68 = tpu.concatenate %61, %63, %65, %67 in 1 : vector<8x32xf32>, vector<8x32xf32>, vector<8x32xf32>, vector<8x32xf32> -> vector<8x128xf32>
    %69 = arith.truncf %68 : vector<8x128xf32> to vector<8x128xbf16>
    %c0_14 = arith.constant 0 : index
    %c0_15 = arith.constant 0 : index
    %c0_16 = arith.constant 0 : index
    %70 = vector.load %arg6[%c0_14, %c0_15, %c0_16] : memref<1x128x128xbf16, #tpu.memory_space<vmem>>, vector<1x128x128xbf16>
    %71 = vector.shape_cast %70 : vector<1x128x128xbf16> to vector<128x128xbf16>
    %cst_17 = arith.constant dense<0.000000e+00> : vector<8x128xf32>
    %72 = tpu.matmul %69, %71, %cst_17 {dimension_numbers = #tpu.dot_dimension_numbers<[1], [0], [0], [1], [0, 0, 1, 1], [], []>} : vector<8x128xbf16>, vector<128x128xbf16>, vector<8x128xf32> -> vector<8x128xf32>
    %c0_18 = arith.constant 0 : index
    %c0_19 = arith.constant 0 : index
    %c0_20 = arith.constant 0 : index
    %73 = vector.load %arg7[%c0_18, %c0_19, %c0_20] : memref<1x1x128xf32, #tpu.memory_space<vmem>>, vector<1x1x128xf32>
    %74 = vector.shape_cast %73 : vector<1x1x128xf32> to vector<1x128xf32>
    %75 = vector.broadcast %74 : vector<1x128xf32> to vector<8x128xf32>
    %76 = arith.addf %72, %75 : vector<8x128xf32>
    %77 = arith.addf %76, %3 : vector<8x128xf32>
    %c0_21 = arith.constant 0 : index
    %c0_22 = arith.constant 0 : index
    %c0_23 = arith.constant 0 : index
    %78 = vector.load %arg8[%c0_21, %c0_22, %c0_23] : memref<1x1x128xf32, #tpu.memory_space<vmem>>, vector<1x1x128xf32>
    %79 = vector.shape_cast %78 : vector<1x1x128xf32> to vector<1x128xf32>
    %c0_24 = arith.constant 0 : index
    %c0_25 = arith.constant 0 : index
    %c0_26 = arith.constant 0 : index
    %80 = vector.load %arg9[%c0_24, %c0_25, %c0_26] : memref<1x1x128xf32, #tpu.memory_space<vmem>>, vector<1x1x128xf32>
    %81 = vector.shape_cast %80 : vector<1x1x128xf32> to vector<1x128xf32>
    %cst_27 = arith.constant dense<0.000000e+00> : vector<8xf32>
    %82 = vector.multi_reduction <add>, %77, %cst_27 [1] : vector<8x128xf32> to vector<8xf32>
    %83 = vector.shape_cast %82 : vector<8xf32> to vector<8x1xf32>
    %cst_28 = arith.constant 1.280000e+02 : f32
    %84 = vector.broadcast %cst_28 : f32 to vector<8x1xf32>
    %85 = arith.divf %83, %84 : vector<8x1xf32>
    %86 = vector.broadcast %85 : vector<8x1xf32> to vector<8x128xf32>
    %87 = arith.subf %77, %86 : vector<8x128xf32>
    %88 = arith.mulf %87, %87 : vector<8x128xf32>
    %cst_29 = arith.constant dense<0.000000e+00> : vector<8xf32>
    %89 = vector.multi_reduction <add>, %88, %cst_29 [1] : vector<8x128xf32> to vector<8xf32>
    %90 = vector.shape_cast %89 : vector<8xf32> to vector<8x1xf32>
    %cst_30 = arith.constant 1.280000e+02 : f32
    %91 = vector.broadcast %cst_30 : f32 to vector<8x1xf32>
    %92 = arith.divf %90, %91 : vector<8x1xf32>
    %cst_31 = arith.constant 9.99999996E-13 : f32
    %93 = vector.broadcast %cst_31 : f32 to vector<8x1xf32>
    %94 = arith.addf %92, %93 : vector<8x1xf32>
    %95 = math.rsqrt %94 : vector<8x1xf32>
    %96 = vector.broadcast %95 : vector<8x1xf32> to vector<8x128xf32>
    %97 = arith.mulf %87, %96 : vector<8x128xf32>
    %98 = vector.broadcast %79 : vector<1x128xf32> to vector<8x128xf32>
    %99 = arith.mulf %97, %98 : vector<8x128xf32>
    %100 = vector.broadcast %81 : vector<1x128xf32> to vector<8x128xf32>
    %101 = arith.addf %99, %100 : vector<8x128xf32>
    %102 = arith.truncf %101 : vector<8x128xf32> to vector<8x128xbf16>
    %c0_32 = arith.constant 0 : index
    %c0_33 = arith.constant 0 : index
    %c0_34 = arith.constant 0 : index
    %103 = vector.load %arg10[%c0_32, %c0_33, %c0_34] : memref<1x128x256xbf16, #tpu.memory_space<vmem>>, vector<1x128x256xbf16>
    %104 = vector.shape_cast %103 : vector<1x128x256xbf16> to vector<128x256xbf16>
    %cst_35 = arith.constant dense<0.000000e+00> : vector<8x256xf32>
    %105 = tpu.matmul %102, %104, %cst_35 {dimension_numbers = #tpu.dot_dimension_numbers<[1], [0], [0], [1], [0, 0, 1, 1], [], []>} : vector<8x128xbf16>, vector<128x256xbf16>, vector<8x256xf32> -> vector<8x256xf32>
    %c0_36 = arith.constant 0 : index
    %c0_37 = arith.constant 0 : index
    %c0_38 = arith.constant 0 : index
    %106 = vector.load %arg11[%c0_36, %c0_37, %c0_38] : memref<1x1x256xf32, #tpu.memory_space<vmem>>, vector<1x1x256xf32>
    %107 = vector.shape_cast %106 : vector<1x1x256xf32> to vector<1x256xf32>
    %108 = vector.broadcast %107 : vector<1x256xf32> to vector<8x256xf32>
    %109 = arith.addf %105, %108 : vector<8x256xf32>
    %110 = arith.mulf %109, %109 : vector<8x256xf32>
    %111 = arith.mulf %109, %110 : vector<8x256xf32>
    %cst_39 = arith.constant 4.471500e-02 : f32
    %112 = vector.broadcast %cst_39 : f32 to vector<8x256xf32>
    %113 = arith.mulf %112, %111 : vector<8x256xf32>
    %114 = arith.addf %109, %113 : vector<8x256xf32>
    %cst_40 = arith.constant 0.797884583 : f32
    %115 = vector.broadcast %cst_40 : f32 to vector<8x256xf32>
    %116 = arith.mulf %115, %114 : vector<8x256xf32>
    %117 = math.tanh %116 : vector<8x256xf32>
    %cst_41 = arith.constant 1.000000e+00 : f32
    %118 = vector.broadcast %cst_41 : f32 to vector<8x256xf32>
    %119 = arith.addf %118, %117 : vector<8x256xf32>
    %cst_42 = arith.constant 5.000000e-01 : f32
    %120 = vector.broadcast %cst_42 : f32 to vector<8x256xf32>
    %121 = arith.mulf %120, %119 : vector<8x256xf32>
    %122 = arith.mulf %109, %121 : vector<8x256xf32>
    %123 = arith.truncf %122 : vector<8x256xf32> to vector<8x256xbf16>
    %c0_43 = arith.constant 0 : index
    %c0_44 = arith.constant 0 : index
    %c0_45 = arith.constant 0 : index
    %124 = vector.load %arg12[%c0_43, %c0_44, %c0_45] : memref<1x256x128xbf16, #tpu.memory_space<vmem>>, vector<1x256x128xbf16>
    %125 = vector.shape_cast %124 : vector<1x256x128xbf16> to vector<256x128xbf16>
    %cst_46 = arith.constant dense<0.000000e+00> : vector<8x128xf32>
    %126 = tpu.matmul %123, %125, %cst_46 {dimension_numbers = #tpu.dot_dimension_numbers<[1], [0], [0], [1], [0, 0, 1, 1], [], []>} : vector<8x256xbf16>, vector<256x128xbf16>, vector<8x128xf32> -> vector<8x128xf32>
    %c0_47 = arith.constant 0 : index
    %c0_48 = arith.constant 0 : index
    %c0_49 = arith.constant 0 : index
    %127 = vector.load %arg13[%c0_47, %c0_48, %c0_49] : memref<1x1x128xf32, #tpu.memory_space<vmem>>, vector<1x1x128xf32>
    %128 = vector.shape_cast %127 : vector<1x1x128xf32> to vector<1x128xf32>
    %129 = vector.broadcast %128 : vector<1x128xf32> to vector<8x128xf32>
    %130 = arith.addf %126, %129 : vector<8x128xf32>
    %131 = arith.addf %130, %101 : vector<8x128xf32>
    %c0_50 = arith.constant 0 : index
    %c0_51 = arith.constant 0 : index
    %c0_52 = arith.constant 0 : index
    %132 = vector.load %arg14[%c0_50, %c0_51, %c0_52] : memref<1x1x128xf32, #tpu.memory_space<vmem>>, vector<1x1x128xf32>
    %133 = vector.shape_cast %132 : vector<1x1x128xf32> to vector<1x128xf32>
    %c0_53 = arith.constant 0 : index
    %c0_54 = arith.constant 0 : index
    %c0_55 = arith.constant 0 : index
    %134 = vector.load %arg15[%c0_53, %c0_54, %c0_55] : memref<1x1x128xf32, #tpu.memory_space<vmem>>, vector<1x1x128xf32>
    %135 = vector.shape_cast %134 : vector<1x1x128xf32> to vector<1x128xf32>
    %cst_56 = arith.constant dense<0.000000e+00> : vector<8xf32>
    %136 = vector.multi_reduction <add>, %131, %cst_56 [1] : vector<8x128xf32> to vector<8xf32>
    %137 = vector.shape_cast %136 : vector<8xf32> to vector<8x1xf32>
    %cst_57 = arith.constant 1.280000e+02 : f32
    %138 = vector.broadcast %cst_57 : f32 to vector<8x1xf32>
    %139 = arith.divf %137, %138 : vector<8x1xf32>
    %140 = vector.broadcast %139 : vector<8x1xf32> to vector<8x128xf32>
    %141 = arith.subf %131, %140 : vector<8x128xf32>
    %142 = arith.mulf %141, %141 : vector<8x128xf32>
    %cst_58 = arith.constant dense<0.000000e+00> : vector<8xf32>
    %143 = vector.multi_reduction <add>, %142, %cst_58 [1] : vector<8x128xf32> to vector<8xf32>
    %144 = vector.shape_cast %143 : vector<8xf32> to vector<8x1xf32>
    %cst_59 = arith.constant 1.280000e+02 : f32
    %145 = vector.broadcast %cst_59 : f32 to vector<8x1xf32>
    %146 = arith.divf %144, %145 : vector<8x1xf32>
    %cst_60 = arith.constant 9.99999996E-13 : f32
    %147 = vector.broadcast %cst_60 : f32 to vector<8x1xf32>
    %148 = arith.addf %146, %147 : vector<8x1xf32>
    %149 = math.rsqrt %148 : vector<8x1xf32>
    %150 = vector.broadcast %149 : vector<8x1xf32> to vector<8x128xf32>
    %151 = arith.mulf %141, %150 : vector<8x128xf32>
    %152 = vector.broadcast %133 : vector<1x128xf32> to vector<8x128xf32>
    %153 = arith.mulf %151, %152 : vector<8x128xf32>
    %154 = vector.broadcast %135 : vector<1x128xf32> to vector<8x128xf32>
    %155 = arith.addf %153, %154 : vector<8x128xf32>
    %c0_61 = arith.constant 0 : index
    %c0_62 = arith.constant 0 : index
    %156 = vector.load %arg21[%c0_61, %c0_62] : memref<8x128xf32, #tpu.memory_space<vmem>>, vector<8x128xf32>
    tpu.vector_store %arg21[%c0_61, %c0_62], %155 {strides = array<i32>} : memref<8x128xf32, #tpu.memory_space<vmem>>, vector<8x128xf32>,
    %c1_i32 = arith.constant 1 : i32
    %157 = arith.cmpi eq, %arg1, %c1_i32 : i32
    %158 = arith.extui %157 : i1 to i32
    %c0_i32_63 = arith.constant 0 : i32
    %159 = arith.cmpi ne, %158, %c0_i32_63 : i32
    scf.if %159 {
      %160 = vector.extract_strided_slice %155 {offsets = [0, 0], sizes = [1, 128], strides = [1, 1]} : vector<8x128xf32> to vector<1x128xf32>
      %161 = arith.truncf %160 : vector<1x128xf32> to vector<1x128xbf16>
      %c0_64 = arith.constant 0 : index
      %c0_65 = arith.constant 0 : index
      %162 = vector.load %arg16[%c0_64, %c0_65] : memref<128x128xbf16, #tpu.memory_space<vmem>>, vector<128x128xbf16>
      %cst_66 = arith.constant dense<0.000000e+00> : vector<1x128xf32>
      %163 = tpu.matmul %161, %162, %cst_66 {dimension_numbers = #tpu.dot_dimension_numbers<[1], [0], [0], [1], [0, 0, 1, 1], [], []>} : vector<1x128xbf16>, vector<128x128xbf16>, vector<1x128xf32> -> vector<1x128xf32>
      %c0_67 = arith.constant 0 : index
      %c0_68 = arith.constant 0 : index
      %164 = vector.load %arg17[%c0_67, %c0_68] : memref<1x128xf32, #tpu.memory_space<vmem>>, vector<1x128xf32>
      %165 = arith.addf %163, %164 : vector<1x128xf32>
      %166 = arith.mulf %165, %165 : vector<1x128xf32>
      %167 = arith.mulf %165, %166 : vector<1x128xf32>
      %cst_69 = arith.constant 4.471500e-02 : f32
      %168 = vector.broadcast %cst_69 : f32 to vector<1x128xf32>
      %169 = arith.mulf %168, %167 : vector<1x128xf32>
      %170 = arith.addf %165, %169 : vector<1x128xf32>
      %cst_70 = arith.constant 0.797884583 : f32
      %171 = vector.broadcast %cst_70 : f32 to vector<1x128xf32>
      %172 = arith.mulf %171, %170 : vector<1x128xf32>
      %173 = math.tanh %172 : vector<1x128xf32>
      %cst_71 = arith.constant 1.000000e+00 : f32
      %174 = vector.broadcast %cst_71 : f32 to vector<1x128xf32>
      %175 = arith.addf %174, %173 : vector<1x128xf32>
      %cst_72 = arith.constant 5.000000e-01 : f32
      %176 = vector.broadcast %cst_72 : f32 to vector<1x128xf32>
      %177 = arith.mulf %176, %175 : vector<1x128xf32>
      %178 = arith.mulf %165, %177 : vector<1x128xf32>
      %179 = arith.truncf %178 : vector<1x128xf32> to vector<1x128xbf16>
      %c0_73 = arith.constant 0 : index
      %c0_74 = arith.constant 0 : index
      %180 = vector.load %arg18[%c0_73, %c0_74] : memref<128x128xbf16, #tpu.memory_space<vmem>>, vector<128x128xbf16>
      %cst_75 = arith.constant dense<0.000000e+00> : vector<1x128xf32>
      %181 = tpu.matmul %179, %180, %cst_75 {dimension_numbers = #tpu.dot_dimension_numbers<[1], [0], [0], [1], [0, 0, 1, 1], [], []>} : vector<1x128xbf16>, vector<128x128xbf16>, vector<1x128xf32> -> vector<1x128xf32>
      %c0_76 = arith.constant 0 : index
      %c0_77 = arith.constant 0 : index
      %182 = vector.load %arg19[%c0_76, %c0_77] : memref<1x128xf32, #tpu.memory_space<vmem>>, vector<1x128xf32>
      %183 = arith.addf %181, %182 : vector<1x128xf32>
      %184 = vector.shape_cast %183 : vector<1x128xf32> to vector<1x128xf32>
      %185 = vector.broadcast %184 : vector<1x128xf32> to vector<8x128xf32>
      %c0_78 = arith.constant 0 : index
      %c0_79 = arith.constant 0 : index
      %c0_80 = arith.constant 0 : index
      %186 = vector.load %arg20[%c0_78, %c0_79, %c0_80] : memref<1x8x128xf32, #tpu.memory_space<vmem>>, vector<1x8x128xf32>
      %187 = vector.shape_cast %186 : vector<1x8x128xf32> to vector<8x128xf32>
      %188 = vector.shape_cast %185 : vector<8x128xf32> to vector<1x8x128xf32>
      tpu.vector_store %arg20[%c0_78, %c0_79, %c0_80], %188 {strides = array<i32>} : memref<1x8x128xf32, #tpu.memory_space<vmem>>, vector<1x8x128xf32>,
    } else {
    }
    return
  }
  func.func @transform_0(%arg0: i32, %arg1: i32) -> (i32, i32, i32) {
    %c0_i32 = arith.constant 0 : i32
    %c0_i32_0 = arith.constant 0 : i32
    %c0_i32_1 = arith.constant 0 : i32
    return %arg0, %c0_i32, %c0_i32_0 : i32, i32, i32
  }
  func.func @transform_1(%arg0: i32, %arg1: i32) -> (i32, i32) {
    %c0_i32 = arith.constant 0 : i32
    %c0_i32_0 = arith.constant 0 : i32
    %c0_i32_1 = arith.constant 0 : i32
    return %c0_i32, %c0_i32_0 : i32, i32
  }
  func.func @transform_2(%arg0: i32, %arg1: i32) -> (i32, i32, i32) {
    %c0_i32 = arith.constant 0 : i32
    %c0_i32_0 = arith.constant 0 : i32
    %c0_i32_1 = arith.constant 0 : i32
    return %arg1, %c0_i32, %c0_i32_0 : i32, i32, i32
  }
  func.func @transform_3(%arg0: i32, %arg1: i32) -> (i32, i32, i32) {
    %c0_i32 = arith.constant 0 : i32
    %c0_i32_0 = arith.constant 0 : i32
    %c0_i32_1 = arith.constant 0 : i32
    return %arg1, %c0_i32, %c0_i32_0 : i32, i32, i32
  }
  func.func @transform_4(%arg0: i32, %arg1: i32) -> (i32, i32, i32) {
    %c0_i32 = arith.constant 0 : i32
    %c0_i32_0 = arith.constant 0 : i32
    %c0_i32_1 = arith.constant 0 : i32
    return %arg1, %c0_i32, %c0_i32_0 : i32, i32, i32
  }
  func.func @transform_5(%arg0: i32, %arg1: i32) -> (i32, i32, i32) {
    %c0_i32 = arith.constant 0 : i32
    %c0_i32_0 = arith.constant 0 : i32
    %c0_i32_1 = arith.constant 0 : i32
    return %arg1, %c0_i32, %c0_i32_0 : i32, i32, i32
  }
  func.func @transform_6(%arg0: i32, %arg1: i32) -> (i32, i32, i32) {
    %c0_i32 = arith.constant 0 : i32
    %c0_i32_0 = arith.constant 0 : i32
    %c0_i32_1 = arith.constant 0 : i32
    return %arg1, %c0_i32, %c0_i32_0 : i32, i32, i32
  }
  func.func @transform_7(%arg0: i32, %arg1: i32) -> (i32, i32, i32) {
    %c0_i32 = arith.constant 0 : i32
    %c0_i32_0 = arith.constant 0 : i32
    %c0_i32_1 = arith.constant 0 : i32
    return %arg1, %c0_i32, %c0_i32_0 : i32, i32, i32
  }
  func.func @transform_8(%arg0: i32, %arg1: i32) -> (i32, i32, i32) {
    %c0_i32 = arith.constant 0 : i32
    %c0_i32_0 = arith.constant 0 : i32
    %c0_i32_1 = arith.constant 0 : i32
    return %arg1, %c0_i32, %c0_i32_0 : i32, i32, i32
  }
  func.func @transform_9(%arg0: i32, %arg1: i32) -> (i32, i32, i32) {
    %c0_i32 = arith.constant 0 : i32
    %c0_i32_0 = arith.constant 0 : i32
    %c0_i32_1 = arith.constant 0 : i32
    return %arg1, %c0_i32, %c0_i32_0 : i32, i32, i32
  }
  func.func @transform_10(%arg0: i32, %arg1: i32) -> (i32, i32, i32) {
    %c0_i32 = arith.constant 0 : i32
    %c0_i32_0 = arith.constant 0 : i32
    %c0_i32_1 = arith.constant 0 : i32
    return %arg1, %c0_i32, %c0_i32_0 : i32, i32, i32
  }
  func.func @transform_11(%arg0: i32, %arg1: i32) -> (i32, i32, i32) {
    %c0_i32 = arith.constant 0 : i32
    %c0_i32_0 = arith.constant 0 : i32
    %c0_i32_1 = arith.constant 0 : i32
    return %arg1, %c0_i32, %c0_i32_0 : i32, i32, i32
  }
  func.func @transform_12(%arg0: i32, %arg1: i32) -> (i32, i32, i32) {
    %c0_i32 = arith.constant 0 : i32
    %c0_i32_0 = arith.constant 0 : i32
    %c0_i32_1 = arith.constant 0 : i32
    return %arg1, %c0_i32, %c0_i32_0 : i32, i32, i32
  }
  func.func @transform_13(%arg0: i32, %arg1: i32) -> (i32, i32, i32) {
    %c0_i32 = arith.constant 0 : i32
    %c0_i32_0 = arith.constant 0 : i32
    %c0_i32_1 = arith.constant 0 : i32
    return %arg1, %c0_i32, %c0_i32_0 : i32, i32, i32
  }
  func.func @transform_14(%arg0: i32, %arg1: i32) -> (i32, i32) {
    %c0_i32 = arith.constant 0 : i32
    %c0_i32_0 = arith.constant 0 : i32
    %c0_i32_1 = arith.constant 0 : i32
    return %c0_i32, %c0_i32_0 : i32, i32
  }
  func.func @transform_15(%arg0: i32, %arg1: i32) -> (i32, i32) {
    %c0_i32 = arith.constant 0 : i32
    %c0_i32_0 = arith.constant 0 : i32
    %c0_i32_1 = arith.constant 0 : i32
    return %c0_i32, %c0_i32_0 : i32, i32
  }
  func.func @transform_16(%arg0: i32, %arg1: i32) -> (i32, i32) {
    %c0_i32 = arith.constant 0 : i32
    %c0_i32_0 = arith.constant 0 : i32
    %c0_i32_1 = arith.constant 0 : i32
    return %c0_i32, %c0_i32_0 : i32, i32
  }
  func.func @transform_17(%arg0: i32, %arg1: i32) -> (i32, i32) {
    %c0_i32 = arith.constant 0 : i32
    %c0_i32_0 = arith.constant 0 : i32
    %c0_i32_1 = arith.constant 0 : i32
    return %c0_i32, %c0_i32_0 : i32, i32
  }
  func.func @transform_18(%arg0: i32, %arg1: i32) -> (i32, i32, i32) {
    %c0_i32 = arith.constant 0 : i32
    %c0_i32_0 = arith.constant 0 : i32
    %c0_i32_1 = arith.constant 0 : i32
    return %arg0, %c0_i32, %c0_i32_0 : i32, i32, i32
  }
}

</mosaic_0001>

<bundles_post_ra>
// kernel: kcelectra_modified_forward.1
= control target key start
LH: loop header
LB: loop body
LE: loop exit
PB: predicated region body
PF: predicated region fallthrough
CT: control target
= control target key end

     0   :  { %s3976_s0 = inlined_call_operand.vmem [shape: f32[2,8,128], index: 0, kind: input, shape index: {}]   ;;  %s3977_s1 = inlined_call_operand.vmem [shape: f32[2,8], index: 1, kind: input, shape index: {}]   ;;  %s3978_s2 = inlined_call_operand.hbm [shape: bf16[2,128,384], index: 2, kind: input, shape index: {}]   ;;  %s3979_s3 = inlined_call_operand.vmem [shape: f32[2,1,384], index: 3, kind: input, shape index: {}]   ;;  %s3980_s4 = inlined_call_operand.hbm [shape: bf16[2,128,128], index: 4, kind: input, shape index: {}]   ;;  %s3981_s5 = inlined_call_operand.vmem [shape: f32[2,1,128], index: 5, kind: input, shape index: {}, may-alias: {5,7,11,13}]   ;;  %s3982_s6 = inlined_call_operand.vmem [shape: f32[2,1,128], index: 6, kind: input, shape index: {}, may-alias: {6,12}]   ;;  %s3983_s7 = inlined_call_operand.vmem [shape: f32[2,1,128], index: 7, kind: input, shape index: {}, may-alias: {5,7,11,13}]   ;;  %s3984_s8 = inlined_call_operand.vmem [shape: bf16[2,128,256], index: 8, kind: input, shape index: {}]   ;;  %s3985_s9 = inlined_call_operand.vmem [shape: f32[2,1,256], index: 9, kind: input, shape index: {}]   ;;  %s3986_s10 = inlined_call_operand.hbm [shape: bf16[2,256,128], index: 10, kind: input, shape index: {}]   ;;  %s3987_s11 = inlined_call_operand.vmem [shape: f32[2,1,128], index: 11, kind: input, shape index: {}, may-alias: {5,7,11,13}]   ;;  %s3988_s12 = inlined_call_operand.vmem [shape: f32[2,1,128], index: 12, kind: input, shape index: {}, may-alias: {6,12}]   ;;  %s3989_s13 = inlined_call_operand.vmem [shape: f32[2,1,128], index: 13, kind: input, shape index: {}, may-alias: {5,7,11,13}]   ;;  %s3990_s14 = inlined_call_operand.hbm [shape: bf16[128,128], index: 14, kind: input, shape index: {}]   ;;  %s3991_s15 = inlined_call_operand.vmem [shape: f32[1,128], index: 15, kind: input, shape index: {}, may-alias: {15,17}]   ;;  %s3992_s16 = inlined_call_operand.hbm [shape: bf16[128,128], index: 16, kind: input, shape index: {}]   ;;  %s3993_s17 = inlined_call_operand.vmem [shape: f32[1,128], index: 17, kind: input, shape index: {}, may-alias: {15,17}]   ;;  %s3994_s18 = inlined_call_operand.vmem [shape: f32[2,8,128], index: 18, kind: output, shape index: {}]  }
   0x1   :  { %4007 = sst [smem:[#allocation23_spill]] %s3976_s0 }
   0x2   :  { %4008 = sst [smem:[#allocation24_spill]] %s3977_s1 }
   0x3   :  { %4009 = sst [smem:[#allocation25_spill]] %s3978_s2 }
   0x4   :  { %4010 = sst [smem:[#allocation26_spill]] %s3979_s3 }
   0x5   :  { %4011 = sst [smem:[#allocation27_spill]] %s3980_s4 }
   0x6   :  { %4012 = sst [smem:[#allocation28_spill]] %s3982_s6 }
   0x7   :  { %4013 = sst [smem:[#allocation29_spill]] %s3983_s7 }
   0x8   :  { %4014 = sst [smem:[#allocation30_spill]] %s3984_s8 }
   0x9   :  { %4015 = sst [smem:[#allocation31_spill]] %s3985_s9 }
   0xa   :  { %4016 = sst [smem:[#allocation32_spill]] %s3986_s10 }
   0xb   :  { %4017 = sst [smem:[#allocation33_spill]] %s3987_s11 }
   0xc   :  { %4018 = sst [smem:[#allocation34_spill]] %s3988_s12 }
   0xd   :  { %4019 = sst [smem:[#allocation35_spill]] %s3989_s13 }
   0xe   :  { %4020 = sst [smem:[#allocation36_spill]] %s3990_s14 }
   0xf   :  { %4021 = sst [smem:[#allocation37_spill]] %s3991_s15 }
  0x10   :  { %4022 = sst [smem:[#allocation38_spill]] %s3992_s16 }
  0x11   :  { %4023 = sst [smem:[#allocation39_spill]] %s3993_s17 }
  0x12   :  { %4024 = sst [smem:[#allocation40_spill]] %s3994_s18 }
  0x13   :  { %23 = vsyncpa [#allocation4], 0 }
  0x14   :  { %25 = vsyncpa [#allocation4 + $0x1], 0 }
  0x15   :  { %26 = vsyncpa [#allocation6], 0 }
  0x16   :  { %28 = vsyncpa [#allocation6 + $0x1], 0 }
  0x17   :  { %29 = vsyncpa [#allocation9], 0  ;;  %s3485_s27 = smov 0   ;;  %s3487_s28 = smov 0  }
  0x18   :  { %s3489_s29 = smov 0   ;;  %s3491_s30 = smov 0  }
  0x19   :  { %s3493_s0 = smov 0   ;;  %s3495_s19 = smov 0  }
  0x1a   :  { %s3497_s1 = smov 0   ;;  %s3499_s20 = smov 0  }
  0x1b LB: > { %4025 = sst [smem:[#allocation14_spill]] %s3347_s28  ;;  %s3995_s21 = sadd.s32 4294967295, %s3371_s20   ;;  %s3371_s20 = sphi %s3499_s20, %s35_s20   ;;  %s3367_s1 = sphi %s3497_s1, %s4078_s1   ;;  %s3363_s19 = sphi %s3495_s19, %s4077_s19   ;;  %s3359_s0 = sphi %s3493_s0, %s4076_s0   ;;  %s3355_s30 = sphi %s3491_s30, %s4075_s30   ;;  %s3351_s29 = sphi %s3489_s29, %s4074_s29   ;;  %s3347_s28 = sphi %s3487_s28, %s4073_s28   ;;  %s3343_s27 = sphi %s3485_s27, %s4072_s27  }
  0x1c   : > { %4026 = sst [smem:[#allocation15_spill]] %s3351_s29  ;;  %p108_p0 = scmp.ne.s32.totalorder %s3351_s29, %s3347_s28 }
  0x1d   : > { %4027 = sst [smem:[#allocation16_spill]] %s3363_s19  ;;  %p109_p1 = scmp.eq.s32.totalorder %s3371_s20, 0 }
  0x1e   : > { %4028 = sst [smem:[#allocation17_spill]] %s3367_s1  ;;  %p114_p2 = scmp.ne.s32.totalorder %s3347_s28, %s3343_s27 }
  0x1f   : > { %4029 = sst [smem:[#allocation18_spill]] %s3371_s20  ;;  %p3531_p3 = scmp.eq.s32.totalorder %s3995_s21, 0 }
  0x20   : > { %p3535_p4 = por %p109_p1, %p108_p0  ;;  %p2596_p5 = scmp.ge.s32.totalorder %s3371_s20, 1 }
  0x21   : > { %p3542_p6 = por %p3531_p3, %p114_p2  ;;  %p521_p7 = scmp.lt.s32.totalorder %s3371_s20, 5 }
  0x22   : > { %s3373_s26 = smov [#allocation8]   ;;  %s44_s22 = sadd.s32 1, %s3363_s19 }
  0x23   : > { %p3547_p8 = pnand %p2596_p5, %p521_p7  ;;  %s536_s27 = sshll.u32 %s3373_s26, 4  ;;  %s537_s27 = int_to_ptr.vmem [resolvable:$true] %s536_s27 }
  0x24   : > { %s3172_s17 = scalar_lea.vmem %s537_s27, 1024  ;;  %p3180_p1 = scmp.lt.s32.totalorder %s537_s27, %s537_s27 }
  0x25   : > { %p2939_p9 = pneg %p3547_p8  ;;  %p3173_p12 = scmp.ne.s32.totalorder %s537_s27, %s3172_s17 }
  0x26   : > { %p3181_p2 = scmp.lt.s32.totalorder %s3172_s17, %s3172_s17 }
  0x27   : > { %p3555_p10 = pnand %p2939_p9, %p3531_p3 }
  0x28   : > { %p3182_p5 = por %p3181_p2, %p3180_p1 }
  0x29   : > { %p3163_p11 = pneg %p3555_p10 }
  0x2b   : > { %p3175_p13 = pnand %p3173_p12, %p3163_p11 }
  0x2d   : > { %p3176_p0 = pneg %p3175_p13 }
  0x2f   : > { %p3183_p7 = pnand %p3182_p5, %p3176_p0 }
  0x31   : > { %3186 = shalt.err (!%p3183_p7)
}
  0x32   : > { %s3996_s26 = smov 64   ;;  %s3998_s15 = smov 4  }
  0x33   : > { %s4035_s14 = sld [smem:[#allocation36_spill]]  ;;  %p45_p9 = scmp.ge.s32.totalorder %s44_s22, 2 }
  0x34   : > { %s47_s13 = sadd.s32 1, %s3367_s1  ;;  %p2958_p12 = scmp.lt.s32.totalorder %s3371_s20, 4 }
  0x35   : > { %s3576_s12 = sand.u32 1, %s3351_s29   ;;  %s4080_s22 = smov (%p45_p9, %s44_s22), 0 }
  0x36   : > { %4036 = sst [smem:[#allocation19_spill]] %s4080_s22  ;;  %s4082_s13 = smov (!%p45_p9, %s47_s13), %s3367_s1 }
  0x37   : > { %s98_s11 = ssub.s32 %s3363_s19, %s4080_s22  ;;  %p3585_p13 = pnand %p2958_p12, %p3535_p4 }
  0x38   : > { %p49_p0 = scmp.ge.s32.totalorder %s4082_s13, 2  ;;  %p99_p1 = scmp.eq.s32.totalorder %s98_s11, 0 }
  0x39   : > { %2942 = dma.hbm_to_vmem [thread:$0]  (!%p3555_p10), %s4035_s14, 1024, %s537_s27, [#allocation9], %s3996_s26, %s3996_s26, %s3998_s15  }
  0x3a   : > { %s604_s18 = sand.u32 1, %s3371_s20   ;;  %s4084_s13 = smov (%p49_p0, %s4082_s13), 0 }
  0x3b   : > { %4038 = sst [smem:[#allocation20_spill]] %s4084_s13  ;;  %s4039_s27 = sadd.s32 1, %s3351_s29 }
  0x3c   : > { %s3595_s17 = scalar_select %p99_p1, %s3351_s29, %s4039_s27  }
  0x3d   : > { %s2601_s26 = sshll.u32 %s3576_s12, 6  ;;  %s2716_s15 = sshll.u32 %s3363_s19, 10 }
  0x3e   : > { %4040 = sst [smem:[#allocation21_spill]] %s3595_s17  ;;  %s608_s22 = scalar_lea.vmem [#allocation5], %s2601_s26 }
  0x3f   : > { %s4041_s4 = sld [smem:[#allocation27_spill]]  ;;  %s615_s8 = sshll.u32 %s608_s22, 4  ;;  %s616_s8 = int_to_ptr.vmem [resolvable:$true] %s615_s8 }
  0x40   : > { %s3602_s7 = scalar_lea.sflag [#allocation6], %s604_s18  ;;  %p3189_p4 = pneg %p3585_p13 }
  0x41   : > { %s3200_s11 = scalar_lea.vmem %s616_s8, 1024  ;;  %s3376_s27 = smov [#allocation5]  }
  0x42   : > { %p3201_p2 = scmp.ne.s32.totalorder %s616_s8, %s3200_s11  ;;  %s3205_s13 = sshll.u32 %s3376_s27, 4  ;;  %s3206_s13 = int_to_ptr.vmem [resolvable:$false] %s3205_s13 }
  0x43   : > { %s3207_s17 = scalar_lea.vmem %s3206_s13, 2048  ;;  %p3208_p9 = scmp.lt.s32.totalorder %s616_s8, %s3206_s13 }
  0x44   : > { %p3203_p5 = pnand %p3201_p2, %p3189_p4  ;;  %p3209_p12 = scmp.lt.s32.totalorder %s3207_s17, %s3200_s11 }
  0x45   : > { %s614_s23 = scalar_lea.hbm %s4041_s4, %s2716_s15 }
  0x46   : > { %p3204_p7 = pneg %p3203_p5  ;;  %p3210_p0 = por %p3209_p12, %p3208_p9 }
  0x48   : > { %p3211_p1 = pnand %p3210_p0, %p3204_p7 }
  0x4a   : > { %3214 = shalt.err (!%p3211_p1)
}
  0x4b   : > { %s4042_s14 = smov 4   ;;  %s4043_s15 = smov 64  }
  0x4c   : > { %2952 = dma.hbm_to_vmem [thread:$0]  (!%p3585_p13), %s614_s23, 1024, %s616_s8, %s3602_s7, %s4043_s15, %s4043_s15, %s4042_s14  }
  0x4d   : > { %s3377_s1 = smov [#allocation10]   ;;  %s2921_s26 = smul.u32 192, %s3576_s12 }
  0x4e   : > { %s552_s22 = sshll.u32 %s3377_s1, 4  ;;  %s553_s22 = int_to_ptr.vmem [resolvable:$true] %s552_s22 }
  0x4f   : > { %s3226_s18 = scalar_lea.vmem %s553_s22, 1024  ;;  %p3234_p9 = scmp.lt.s32.totalorder %s553_s22, %s553_s22 }
  0x50   : > { %p3227_p2 = scmp.ne.s32.totalorder %s553_s22, %s3226_s18  ;;  %p3235_p12 = scmp.lt.s32.totalorder %s3226_s18, %s3226_s18 }
  0x52   : > { %p3229_p5 = pnand %p3227_p2, %p3163_p11  ;;  %p3236_p0 = por %p3235_p12, %p3234_p9 }
  0x54   : > { %p3230_p7 = pneg %p3229_p5 }
  0x56   : > { %p3237_p1 = pnand %p3236_p0, %p3230_p7 }
  0x58   : > { %3240 = shalt.err (!%p3237_p1)
}
  0x59   : > { %s4044_s16 = sld [smem:[#allocation38_spill]]  ;;  %s2922_s17 = smul.u32 3072, %s3363_s19 }
  0x5a   : > { %s580_s23 = scalar_lea.vmem [#allocation3], %s2921_s26  ;;  %s4045_s18 = sld [smem:[#allocation25_spill]] }
  0x5b   : > { %s587_s11 = sshll.u32 %s580_s23, 4  ;;  %s2604_s21 = sshll.u32 %s3576_s12, 7  ;;  %s588_s11 = int_to_ptr.vmem [resolvable:$true] %s587_s11 }
  0x5c   : > { %s577_s29 = scalar_lea.sflag [#allocation4], %s3576_s12  ;;  %s3254_s3 = scalar_lea.vmem %s588_s11, 3072 }
  0x5d   : > { %p3255_p11 = scmp.ne.s32.totalorder %s588_s11, %s3254_s3  ;;  %s3378_s8 = smov [#allocation3]  }
  0x5e   : > { %s3259_s13 = sshll.u32 %s3378_s8, 4  ;;  %s3260_s13 = int_to_ptr.vmem [resolvable:$false] %s3259_s13 }
  0x5f   : > { %2945 = dma.hbm_to_vmem [thread:$0]  (!%p3555_p10), %s4044_s16, 1024, %s553_s22, [#allocation9], %s4043_s15, %s4043_s15, %s4042_s14  }
  0x60   : > { %s586_s4 = scalar_lea.hbm %s4045_s18, %s2922_s17  ;;  %p3257_p2 = pnand %p3255_p11, %p3189_p4 }
  0x61   : > { %s3261_s22 = scalar_lea.vmem %s3260_s13, 6144  ;;  %p3262_p10 = scmp.lt.s32.totalorder %s588_s11, %s3260_s13 }
  0x62   : > { %p3258_p5 = pneg %p3257_p2  ;;  %p3263_p7 = scmp.lt.s32.totalorder %s3261_s22, %s3254_s3 }
  0x64   : > { %p3264_p9 = por %p3263_p7, %p3262_p10 }
  0x66   : > { %p3265_p12 = pnand %p3264_p9, %p3258_p5 }
  0x68   : > { %3268 = shalt.err (!%p3265_p12)
}
  0x69   : > { %s3379_s26 = smov 192   ;;  %s3380_s12 = smov 12  }
  0x6a   : > { %2949 = dma.hbm_to_vmem [thread:$0]  (!%p3585_p13), %s586_s4, 3072, %s588_s11, %s577_s29, %s3379_s26, %s3379_s26, %s3380_s12  }
  0x6b   : > { %s2717_s17 = sshll.u32 %s3363_s19, 11  ;;  %s4046_s10 = sld [smem:[#allocation32_spill]] }
  0x6c   : > { %s662_s18 = scalar_lea.vmem [#allocation7], %s2604_s21  ;;  %s3381_s3 = smov [#allocation7]  }
  0x6d   : > { %s669_s8 = sshll.u32 %s662_s18, 4  ;;  %s3287_s22 = sshll.u32 %s3381_s3, 4  ;;  %s670_s8 = int_to_ptr.vmem [resolvable:$true] %s669_s8  ;;  %s3288_s22 = int_to_ptr.vmem [resolvable:$false] %s3287_s22 }
  0x6e   : > { %s3282_s13 = scalar_lea.vmem %s670_s8, 2048  ;;  %s3289_s16 = scalar_lea.vmem %s3288_s22, 4096 }
  0x6f   : > { %p3283_p0 = scmp.ne.s32.totalorder %s670_s8, %s3282_s13  ;;  %p3290_p2 = scmp.lt.s32.totalorder %s670_s8, %s3288_s22 }
  0x70   : > { %p3291_p5 = scmp.lt.s32.totalorder %s3289_s16, %s3282_s13 }
  0x71   : > { %s668_s1 = scalar_lea.hbm %s4046_s10, %s2717_s17  ;;  %p3285_p1 = pnand %p3283_p0, %p3189_p4 }
  0x72   : > { %p3292_p10 = por %p3291_p5, %p3290_p2 }
  0x73   : > { %p3286_p11 = pneg %p3285_p1 }
  0x75   : > { %p3293_p7 = pnand %p3292_p10, %p3286_p11 }
  0x77   : > { %3296 = shalt.err (!%p3293_p7)
}
  0x78   : > { %2955 = dma.hbm_to_vmem [thread:$0]  (!%p3585_p13), %s668_s1, 2048, %s670_s8, %s3602_s7, %s4043_s15, %s4043_s15, %s4042_s14  }
  0x79   : > { %699 = sbr.rel (%p3547_p8) target bundleno = 3056 (0xbf0), region = 92 }
  0x7e   : > { %s701_s4 = sand.u32 1, %s3347_s28  }
  0x7f   : > { %s2923_s29 = smul.u32 192, %s701_s4  ;;  %s702_s11 = scalar_lea.sflag [#allocation4], %s701_s4 }
  0x81   : > { %s3654_s21 = scalar_lea.vmem [#allocation3], %s2923_s29 }
  0x82   : > { %3330 = dma.done.wait (%p3542_p6), %s702_s11, 3072  }
  0x83   : > { %3332 = vsyncadd (%p3542_p6), %s702_s11, 4294964224  ;;  %s4047_s9 = sadd.s32 4294967295, %s3371_s20   ;;  %s2608_s7 = sshll.u32 %s701_s4, 6 }
  0x84   : > { %s710_s16 = sand.u32 1, %s4047_s9   ;;  %s3662_s25 = scalar_lea.vmem [#allocation5], %s2608_s7 }
  0x85   : > { %s711_s14 = scalar_lea.sflag [#allocation6], %s710_s16 }
  0x86   : > { %3334 = dma.done.wait (%p3542_p6), %s711_s14, 3072  }
  0x87   : > { %3336 = vsyncadd (%p3542_p6), %s711_s14, 4294964224  ;;  %s2609_s15 = sshll.u32 %s701_s4, 7 }
  0x88   : > { %s3668_s26 = scalar_lea.vmem [#allocation7], %s2609_s15 }
  0x89   : > { %4048 = sst [smem:[#allocation22_spill]] %s3668_s26 }
  0x8a   : > { %3338 = dma.done.wait (%p3531_p3), [#allocation9], 2048  }
  0x8b   : > { %3340 = vsyncadd (%p3531_p3), [#allocation9], 4294965248  ;;  %p828_p8 = scmp.lt.s32.totalorder %s3359_s0, 1  ;;  %p832_p13 = scmp.lt.s32.totalorder %s3355_s30, 1 }
  0x8c   : > { %s4049_s27 = sld [smem:[#allocation23_spill]]  ;;  %p2617_p3 = scmp.ne.s32.totalorder %s3355_s30, 0 }
  0x8d   : > { %s829_s12 = scalar_select %p828_p8, %s3359_s0, 1 }
  0x8e   : > { %s3678_s17 = scalar_select %p832_p13, %s3355_s30, 1 }
  0x8f   : > { %s2612_s2 = sshll.u32 %s829_s12, 3  ;;  %s4051_s16 = sld [smem:[#allocation26_spill]] }
  0x90   : > { %s2924_s18 = smul.u32 3, %s3678_s17  ;;  %s2718_s24 = sshll.u32 %s3678_s17, 7 }
  0x91   : > { %s2615_s23 = sshll.u32 %s3678_s17, 1  ;;  %s4053_s28 = sld [smem:[#allocation30_spill]] }
  0x92   : > { %s831_s1 = scalar_lea.vmem %s4049_s27, %s2612_s2  ;;  %s4054_s22 = sld [smem:[#allocation31_spill]] }
  0x93   : > { %s4056_s14 = sld [smem:[#allocation34_spill]] }
  0x94   : > { %s4057_s6 = sld [smem:[#allocation35_spill]] }
  0x95   : > { %s3695_s7 = scalar_lea.vmem %s4051_s16, %s2924_s18  ;;  %s4055_s18 = sld [smem:[#allocation33_spill]] }
  0x97   : > { %s3706_s8 = scalar_lea.vmem %s4053_s28, %s2718_s24  ;;  %s4058_s24 = sld [smem:[#allocation40_spill]] }
  0x98   : > { %s3711_s4 = scalar_lea.vmem %s4054_s22, %s2615_s23 }
  0x99   : > { %s859_s15 = scalar_lea.vmem %s4056_s14, %s3678_s17  ;;  %871 = sbr.rel (%p2617_p3) target bundleno = 160 (0xa0), region = 116 }
  0x9a   : > { %s862_s26 = scalar_lea.vmem %s4057_s6, %s3678_s17 }
  0x9b   : > { %s856_s9 = scalar_lea.vmem %s4055_s18, %s3678_s17 }
  0x9d   : > { %s3728_s27 = scalar_lea.vmem %s4058_s24, %s2612_s2 }
  0x9e   : > { %v872_v0 = vld [vmem:[%s831_s1] sm:$0xff] }
  0x9f   : > { %873 = vst [vmem:[#allocation2] sm:$0xff] %v872_v0 }
  0xa0 PF: > { %v3039_v1 = vld [vmem:[%s3654_s21 + $0xac] ss:$12 sps:$4 sm:$0xff]   ;;  %v3041_v2 = vld [vmem:[%s3654_s21 + $0xa8] ss:$12 sps:$4 sm:$0xff]   ;;  %v3382_v3 = vmov 0   ;;  %v3383_v4 = vmov 0.0   ;;  %v910_v29 = vlaneseq  ;;  %s4060_s29 = scalar_lea.vmem %s3981_s5, %s3678_s17 }
  0xa1   : > { %1085 = vmatprep.mubr.bf16.mxu0 %v3382_v3  ;;  %2793 = vmatprep.subr.bf16.mxu1 %v3383_v4  ;;  %v3042_v5 = vld [vmem:[%s3654_s21 + $0x94] ss:$12 sps:$4 sm:$0xff]   ;;  %v3044_v6 = vld [vmem:[%s3654_s21 + $0x90] ss:$12 sps:$4 sm:$0xff]   ;;  %v3047_v8 = vld [vmem:[%s3654_s21 + $0x78] ss:$12 sps:$4 sm:$0xff]  }
  0xa2   : > { %1053 = vmatprep.subr.bf16.mxu0 %v3039_v1  ;;  %v3045_v7 = vld [vmem:[%s3654_s21 + $0x7c] ss:$12 sps:$4 sm:$0xff]   ;;  %v3048_v9 = vld [vmem:[%s3654_s21 + $0x64] ss:$12 sps:$4 sm:$0xff]   ;;  %v3050_v10 = vld [vmem:[%s3654_s21 + $0x60] ss:$12 sps:$4 sm:$0xff]  }
  0xa3   : > { %1054 = vmatpush1.bf16.msra.mxu0 %v3041_v2  ;;  %v3063_v11 = vld [vmem:[%s3654_s21 + $0xb0] ss:$12 sps:$4 sm:$0xff]   ;;  %v3051_v12 = vld [vmem:[%s3654_s21 + $0x4c] ss:$12 sps:$4 sm:$0xff]   ;;  %v3053_v14 = vld [vmem:[%s3654_s21 + $0x48] ss:$12 sps:$4 sm:$0xff]  }
  0xa4   : > { %1055 = vmatprep.subr.bf16.mxu0 %v3042_v5  ;;  %2794 = vmatpush3.bf16.msra.mxu1 %v3063_v11  ;;  %v3064_v13 = vld [vmem:[%s3654_s21 + $0x98] ss:$12 sps:$4 sm:$0xff]   ;;  %v3054_v15 = vld [vmem:[%s3654_s21 + $0x34] ss:$12 sps:$4 sm:$0xff]   ;;  %v3056_v16 = vld [vmem:[%s3654_s21 + $0x30] ss:$12 sps:$4 sm:$0xff]  }
  0xa5   : > { %2795 = vmatprep.subr.bf16.mxu1 %v3383_v4  ;;  %v3065_v17 = vld [vmem:[%s3654_s21 + $0x80] ss:$12 sps:$4 sm:$0xff]   ;;  %v3057_v18 = vld [vmem:[%s3654_s21 + $0x1c] ss:$12 sps:$4 sm:$0xff]   ;;  %v3059_v20 = vld [vmem:[%s3654_s21 + $0x18] ss:$12 sps:$4 sm:$0xff]  }
  0xa6   : > { %v3066_v19 = vld [vmem:[%s3654_s21 + $0x68] ss:$12 sps:$4 sm:$0xff]   ;;  %v3060_v21 = vld [vmem:[%s3654_s21 + $0x4] ss:$12 sps:$4 sm:$0xff]   ;;  %v3062_v23 = vld [vmem:[%s3654_s21] ss:$12 sps:$4 sm:$0xff]  }
  0xa7   : > { %1056 = vmatpush1.bf16.msra.mxu0 %v3044_v6  ;;  %v3067_v22 = vld [vmem:[%s3654_s21 + $0x50] ss:$12 sps:$4 sm:$0xff]   ;;  %v3068_v25 = vld [vmem:[%s3654_s21 + $0x38] ss:$12 sps:$4 sm:$0xff]   ;;  %v3069_v27 = vld [vmem:[%s3654_s21 + $0x20] ss:$12 sps:$4 sm:$0xff]  }
  0xa8   : > { %1057 = vmatprep.subr.bf16.mxu0 %v3045_v7  ;;  %2796 = vmatpush3.bf16.msra.mxu1 %v3064_v13  ;;  %v3757_v24 = vld [vmem:[#allocation2] sm:$0xff]  ;;  %v3070_v28 = vld [vmem:[%s3654_s21 + $0x8] ss:$12 sps:$4 sm:$0xff]   ;;  %vm3384_vm0 = vmmov 0   ;;  %v3776_v30 = vshrl.u32 %v910_v29, 7  ;;  %vm1160_vm1 = vcmask 261120  }
  0xa9   : > { %2797 = vmatprep.subr.bf16.mxu1 %v3383_v4  ;;  %v875_v26 = vpack.c.bf16 %v3757_v24, %v3757_v24  ;;  %2809 = vmatprep.mubr.msk.bf16.mxu1 %vm3384_vm0, %v3383_v4  ;;  %v908_v33 = vld [vmem:[%s3695_s7] sm:$0x7]  ;;  %s3385_s6 = smov 64   ;;  %s3386_s10 = smov 96   ;;  %vm1409_vm2 = vcmask 1043456   ;;  %vm1357_vm3 = vcmask 64512  }
  0xaa   : > { %v916_v31 = vsub.s32 1, %v3776_v30  ;;  %v3780_v32 = vsub.s32 0, %v3776_v30  ;;  %s3387_s20 = smov 32   ;;  %v920_v45 = vsub.s32 2, %v3776_v30  ;;  %s4059_s1 = sld [smem:[#allocation24_spill]]  ;;  %vm1604_vm4 = vcmask 523264  }
  0xab   : > { %1058 = vmatpush1.bf16.msra.mxu0 %v3047_v8  ;;  %vm1606_vm5 = vcmask 785408   ;;  %s4061_s7 = sld [smem:[#allocation22_spill]]  ;;  %p2697_p6 = scmp.ne.s32.totalorder %s3355_s30, 1 }
  0xac   : > { %1059 = vmatprep.subr.bf16.mxu0 %v3048_v9  ;;  %2798 = vmatpush3.bf16.msra.mxu1 %v3065_v17  ;;  %v917_v34 = vrot.slane %v908_v33, %v916_v31  ;;  %v913_v36 = vrot.slane %v908_v33, %v3780_v32  ;;  %v921_v48 = vrot.slane %v908_v33, %v920_v45  ;;  %s4062_s22 = sld [smem:[#allocation28_spill]] }
  0xad   : > { %2799 = vmatprep.subr.bf16.mxu1 %v3383_v4  ;;  %s4064_s16 = sld [smem:[#allocation29_spill]] }
  0xae   : > { %s4070_s2 = sld [smem:[#allocation39_spill]] (!%p2697_p6) }
  0xaf   : > { %1060 = vmatpush1.bf16.msra.mxu0 %v3050_v10 }
  0xb0   : > { %1061 = vmatprep.subr.bf16.mxu0 %v3051_v12  ;;  %2800 = vmatpush3.bf16.msra.mxu1 %v3066_v19  ;;  %s1158_s3 = scalar_lea.vmem %s4059_s1, %s3359_s0 }
  0xb1   : > { %2801 = vmatprep.subr.bf16.mxu1 %v3383_v4  ;;  %v2646_v0 = vld [vmem:[%s1158_s3] ss:$0 sm:$0xff] }
  0xb2   : > { %s4063_s11 = scalar_lea.vmem %s4062_s22, %s3678_s17 }
  0xb3   : > { %1062 = vmatpush1.bf16.msra.mxu0 %v3053_v14  ;;  %s4065_s14 = scalar_lea.vmem %s4064_s16, %s3678_s17  ;;  %s4069_s17 = sld [smem:[#allocation37_spill]] (!%p2697_p6) }
  0xb4   : > { %1063 = vmatprep.subr.bf16.mxu0 %v3054_v15  ;;  %2802 = vmatpush3.bf16.msra.mxu1 %v3067_v22 }
  0xb5   : > { %2803 = vmatprep.subr.bf16.mxu1 %v3383_v4 }
  0xb7   : > { %1064 = vmatpush1.bf16.msra.mxu0 %v3056_v16 }
  0xb8   : > { %1065 = vmatprep.subr.bf16.mxu0 %v3057_v18  ;;  %2804 = vmatpush3.bf16.msra.mxu1 %v3068_v25 }
  0xb9   : > { %2805 = vmatprep.subr.bf16.mxu1 %v3383_v4 }
  0xbb   : > { %1066 = vmatpush1.bf16.msra.mxu0 %v3059_v20 }
  0xbc   : > { %1067 = vmatprep.subr.bf16.mxu0 %v3060_v21  ;;  %2806 = vmatpush3.bf16.msra.mxu1 %v3069_v27 }
  0xbd   : > { %2807 = vmatprep.subr.bf16.mxu1 %v3383_v4 }
  0xbf   : > { %1068 = vmatpush1.bf16.msra.mxu0 %v3062_v23 }
  0xc0   : > { %2837 = vmatprep.subr.bf16.mxu0 %v3383_v4  ;;  %2808 = vmatpush3.bf16.msra.mxu1 %v3070_v28 }
  0xc1   : > { %2813 = vmatprep.subr.bf16.mxu1 %v3383_v4 }
  0xc2   : > { %1086 = vmatmul.mubr.bf16.vlgmr.msra.gmra.mxu0 %v875_v26 }
  0xc3   : > { %2839 = vmatprep.mubr.msk.bf16.mxu0 %vm3384_vm0, %v3383_v4  ;;  %2810 = vmatmul.mubr.bf16.vlgmr.msra.gmra.mxu1 %v875_v26 }
  0xc4   : > { %2815 = vmatprep.mubr.msk.bf16.mxu1 %vm3384_vm0, %v3383_v4 }
 0x182   : > { %v1087_v35 = vpop.f32.mrf.mxu0 }
 0x183   : > { %v1088_v40 = vadd.f32 %v1087_v35, %v913_v36  ;;  %v1128_v46 = vpop.f32.mrf.mxu1 }
 0x184   : > { %v1089_v37 = vpop.f32.mrf.mxu0  ;;  %v1129_v51 = vadd.f32 %v1128_v46, %v921_v48 }
 0x185   : > { %v1090_v38 = vadd.f32 %v1089_v37, %v917_v34  ;;  %v1134_v44 = vpack.c.bf16 %v1088_v40, %v1088_v40  ;;  %v2811_v47 = vpop.f32.mrf.mxu1 }
 0x186   : > { %v1091_v39 = vpop.f32.mrf.mxu0  ;;  %v3798_v52 = vpack.c.bf16 %v1129_v51, %v1129_v51 }
 0x187   : > { %v1135_v41 = vpack.c.bf16 %v1090_v38, %v1090_v38  ;;  %v1131_v49 = vpop.f32.mrf.mxu1 }
 0x188   : > { %v1092_v42 = vpop.f32.mrf.mxu0  ;;  %v1411_v53 = vsel %vm1409_vm2, %v3798_v52, 0 }
 0x189   : > { %1147 = vrot.lane.b32.xlu1 %v1135_v41, %s3385_s6  ;;  %1145 = vrot.lane.b32.xlu0 %v1135_v41, %s3386_s10  ;;  %v1165_v43 = vsel %vm1160_vm1, %v1135_v41, 0  ;;  %v2812_v50 = vpop.f32.mrf.mxu1 }
 0x18a   : > { %2814 = vmatpush3.bf16.xpose.msra.mxu1 %v1165_v43  ;;  %2838 = vmatpush3.bf16.msra.mxu0 %v1411_v53 }
 0x18b   : > { %2819 = vmatprep.subr.bf16.mxu1 %v3383_v4  ;;  %2849 = vmatprep.subr.bf16.mxu0 %v3383_v4 }
 0x18d   : > { %1140 = vrot.lane.b32.xlu1 %v1134_v44, %s3385_s6  ;;  %1138 = vrot.lane.b32.xlu0 %v1134_v44, %s3386_s10 }
 0x191   : > { %1142 = vrot.lane.b32.xlu1 %v1134_v44, %s3387_s20  ;;  %1149 = vrot.lane.b32.xlu0 %v1135_v41, %s3387_s20 }
 0x192   : > { %2816 = vmatmul.mubr.msk.bf16.vlgmr.msra.gmra.mxu1 %vm1160_vm1, %v1134_v44 }
 0x193   : > { %2821 = vmatprep.mubr.msk.bf16.mxu1 %vm3384_vm0, %v3383_v4 }
 0x1fb   : > { %v1146_v54 = vpop.permute.xlu0 %1145  ;;  %v1148_v56 = vpop.permute.xlu1 %1147 }
 0x1fc   : > { %v1211_v55 = vsel %vm1160_vm1, %v1146_v54, 0  ;;  %v1257_v58 = vsel %vm1160_vm1, %v1148_v56, 0 }
 0x1fd   : > { %2820 = vmatpush3.bf16.xpose.msra.mxu1 %v1211_v55 }
 0x1fe   : > { %2825 = vmatprep.subr.bf16.mxu1 %v3383_v4 }
 0x1ff   : > { %v1139_v57 = vpop.permute.xlu0 %1138  ;;  %v1141_v60 = vpop.permute.xlu1 %1140 }
 0x203   : > { %v1150_v59 = vpop.permute.xlu0 %1149  ;;  %v1143_v62 = vpop.permute.xlu1 %1142 }
 0x204   : > { %2822 = vmatmul.mubr.msk.bf16.vlgmr.msra.gmra.mxu1 %vm1160_vm1, %v1139_v57  ;;  %v1303_v61 = vsel %vm1160_vm1, %v1150_v59, 0 }
 0x205   : > { %2826 = vmatpush3.bf16.xpose.msra.mxu1 %v1257_v58  ;;  %2827 = vmatprep.mubr.msk.bf16.mxu1 %vm3384_vm0, %v3383_v4 }
 0x206   : > { %2831 = vmatprep.subr.bf16.mxu1 %v3383_v4 }
 0x20c   : > { %2828 = vmatmul.mubr.msk.bf16.vlgmr.msra.gmra.mxu1 %vm1160_vm1, %v1141_v60 }
 0x20d   : > { %2832 = vmatpush3.bf16.xpose.msra.mxu1 %v1303_v61  ;;  %2833 = vmatprep.mubr.msk.bf16.mxu1 %vm3384_vm0, %v3383_v4 }
 0x20e   : > { %2843 = vmatprep.subr.bf16.mxu1 %v3383_v4 }
 0x214   : > { %2834 = vmatmul.mubr.msk.bf16.vlgmr.msra.gmra.mxu1 %vm1160_vm1, %v1143_v62 }
 0x215   : > { %2845 = vmatprep.mubr.msk.bf16.mxu1 %vm3384_vm0, %v3383_v4 }
 0x252   : > { %v1201_v63 = vpop.f32.mrf.mxu1 }
 0x253   : > { %v1345_v1 = vmul.f32 0.17677669, %v1201_v63 }
 0x254   : > { %v2817_v2 = vpop.f32.mrf.mxu1 }
 0x255   : > { %v1353_v5 = vadd.f32 %v2646_v0, %v1345_v1 }
 0x256   : > { %v1204_v6 = vpop.f32.mrf.mxu1 }
 0x257   : > { %v1358_v7 = vsel %vm1357_vm3, %v1353_v5, -inf }
 0x258   : > { %1359 = vmax.xlane.f32.xlu0 %v1358_v7  ;;  %v2818_v8 = vpop.f32.mrf.mxu1 }
 0x2c4   : > { %v1247_v9 = vpop.f32.mrf.mxu1 }
 0x2c5   : > { %v1346_v10 = vmul.f32 0.17677669, %v1247_v9 }
 0x2c6   : > { %v2823_v11 = vpop.f32.mrf.mxu1 }
 0x2c7   : > { %v1354_v12 = vadd.f32 %v2646_v0, %v1346_v10 }
 0x2c8   : > { %v1250_v13 = vpop.f32.mrf.mxu1 }
 0x2c9   : > { %v1361_v14 = vsel %vm1357_vm3, %v1354_v12, -inf }
 0x2ca   : > { %1362 = vmax.xlane.f32.xlu1 %v1361_v14  ;;  %v2824_v15 = vpop.f32.mrf.mxu1  ;;  %v3071_v14 = vld [vmem:[%s3662_s25 + $0x38] sm:$0xff]  }
 0x2cc   : > { %v1293_v16 = vpop.f32.mrf.mxu1 }
 0x2cd   : > { %v1347_v17 = vmul.f32 0.17677669, %v1293_v16  ;;  %v3072_v16 = vld [vmem:[%s3662_s25 + $0x30] sm:$0xff]  }
 0x2ce   : > { %v2829_v18 = vpop.f32.mrf.mxu1 }
 0x2cf   : > { %v1355_v19 = vadd.f32 %v2646_v0, %v1347_v17 }
 0x2d0   : > { %v1296_v20 = vpop.f32.mrf.mxu1 }
 0x2d1   : > { %v1364_v21 = vsel %vm1357_vm3, %v1355_v19, -inf }
 0x2d2   : > { %1365 = vmax.xlane.f32.xlu0 %v1364_v21  ;;  %v2830_v22 = vpop.f32.mrf.mxu1  ;;  %v3075_v21 = vld [vmem:[%s3662_s25 + $0x18] sm:$0xff]  }
 0x2d3   : > { %v3076_v22 = vld [vmem:[%s3662_s25 + $0x10] sm:$0xff]  }
 0x2d4   : > { %v1339_v23 = vpop.f32.mrf.mxu1 }
 0x2d5   : > { %v1348_v25 = vmul.f32 0.17677669, %v1339_v23  ;;  %v3077_v23 = vld [vmem:[%s3662_s25 + $0x8] sm:$0xff]  }
 0x2d6   : > { %v2835_v26 = vpop.f32.mrf.mxu1 }
 0x2d7   : > { %v1356_v27 = vadd.f32 %v2646_v0, %v1348_v25 }
 0x2d8   : > { %v1342_v28 = vpop.f32.mrf.mxu1 }
 0x2d9   : > { %v1367_v29 = vsel %vm1357_vm3, %v1356_v27, -inf }
 0x2da   : > { %1368 = vmax.xlane.f32.xlu0 %v1367_v29  ;;  %v2836_v33 = vpop.f32.mrf.mxu1 }
 0x2db   : > { %1152 = vrot.lane.b32.xlu1 %v3798_v52, %s3386_s10 }
 0x2e1   : > { %v1360_v34 = vpop.xlane.xlu0 %1359 }
 0x2e2   : > { %v1370_v35 = vsub.f32 %v1353_v5, %v1360_v34 }
 0x2e4   : > { %v1374_v36 = vmul.f32 1.442695, %v1370_v35 }
 0x2e6   : > { %3119 = vpow2.f32 %v1374_v36 }
 0x2f3   : > { %v3120_v37 = vpop.eup %3119 }
 0x2f4   : > { %v1382_v38 = vsel %vm1357_vm3, %v3120_v37, 0.0 }
 0x2ff   : > { %1383 = vadd.xlane.f32.xlu1 %v1382_v38 }
 0x353   : > { %v1363_v39 = vpop.xlane.xlu1 %1362 }
 0x354   : > { %v1371_v40 = vsub.f32 %v1354_v12, %v1363_v39 }
 0x356   : > { %v1376_v41 = vmul.f32 1.442695, %v1371_v40 }
 0x357   : > { %v1153_v42 = vpop.permute.xlu1 %1152 }
 0x358   : > { %3121 = vpow2.f32 %v1376_v41  ;;  %v1457_v43 = vsel %vm1409_vm2, %v1153_v42, 0 }
 0x359   : > { %2844 = vmatpush3.bf16.msra.mxu1 %v1457_v43 }
 0x35a   : > { %2855 = vmatprep.subr.bf16.mxu1 %v3383_v4 }
 0x35b   : > { %v1366_v44 = vpop.xlane.xlu0 %1365 }
 0x35c   : > { %v1372_v45 = vsub.f32 %v1355_v19, %v1366_v44  ;;  %v3073_v19 = vld [vmem:[%s3662_s25 + $0x28] sm:$0xff]  }
 0x35e   : > { %v1378_v46 = vmul.f32 1.442695, %v1372_v45 }
 0x360   : > { %3123 = vpow2.f32 %v1378_v46 }
 0x363   : > { %v1369_v47 = vpop.xlane.xlu0 %1368 }
 0x364   : > { %v1373_v48 = vsub.f32 %v1356_v27, %v1369_v47  ;;  %v3078_v27 = vld [vmem:[%s3662_s25] sm:$0xff]   ;;  %v2651_v47 = vld [vmem:[%s4060_s29] ss:$0 sm:$0xff] }
 0x365   : > { %v3122_v49 = vpop.eup %3121 }
 0x366   : > { %v1380_v50 = vmul.f32 1.442695, %v1373_v48  ;;  %v1385_v51 = vsel %vm1357_vm3, %v3122_v49, 0.0 }
 0x367   : > { %1386 = vadd.xlane.f32.xlu0 %v1385_v51 }
 0x368   : > { %3125 = vpow2.f32 %v1380_v50 }
 0x36d   : > { %v3124_v53 = vpop.eup %3123 }
 0x36e   : > { %v1388_v54 = vsel %vm1357_vm3, %v3124_v53, 0.0 }
 0x36f   : > { %1389 = vadd.xlane.f32.xlu1 %v1388_v54 }
 0x375   : > { %v3126_v55 = vpop.eup %3125 }
 0x376   : > { %v1391_v56 = vsel %vm1357_vm3, %v3126_v55, 0.0 }
 0x377   : > { %1392 = vadd.xlane.f32.xlu0 %v1391_v56  ;;  %v3081_v56 = vld [vmem:[%s3706_s8 + $0x74] ss:$8 sps:$4 sm:$0xff]  }
 0x380   : > { %1156 = vrot.lane.b32.xlu1 %v3798_v52, %s3387_s20 }
 0x388   : > { %v1384_v57 = vpop.xlane.xlu1 %1383 }
 0x389   : > { %3127 = vrcp.f32 %v1384_v57  ;;  %v3084_v57 = vld [vmem:[%s3706_s8 + $0x64] ss:$8 sps:$4 sm:$0xff]  }
 0x38d   : > { %1154 = vrot.lane.b32.xlu0 %v3798_v52, %s3385_s6 }
 0x396   : > { %v3128_v58 = vpop.eup %3127 }
 0x397   : > { %v1398_v59 = vmul.f32 %v3128_v58, %v3120_v37  ;;  %v3082_v58 = vld [vmem:[%s3706_s8 + $0x60] ss:$8 sps:$4 sm:$0xff]  }
 0x399   : > { %v1402_v60 = vpack.c.bf16 %v1398_v59, %v1398_v59 }
 0x39b   : > { %2840 = vmatmul.mubr.msk.bf16.vlgmr.msra.gmra.mxu0 %vm1357_vm3, %v1402_v60 }
 0x39c   : > { %2851 = vmatprep.mubr.msk.bf16.mxu0 %vm3384_vm0, %v3383_v4 }
 0x3f0   : > { %v1387_v61 = vpop.xlane.xlu0 %1386 }
 0x3f1   : > { %3129 = vrcp.f32 %v1387_v61 }
 0x3f8   : > { %v1390_v62 = vpop.xlane.xlu1 %1389 }
 0x3f9   : > { %3131 = vrcp.f32 %v1390_v62  ;;  %v3087_v62 = vld [vmem:[%s3706_s8 + $0x54] ss:$8 sps:$4 sm:$0xff]  }
 0x3fc   : > { %v1157_v1 = vpop.permute.xlu1 %1156 }
 0x3fd   : > { %v1549_v52 = vsel %vm1409_vm2, %v1157_v1, 0  ;;  %v3090_v1 = vld [vmem:[%s3706_s8 + $0x44] ss:$8 sps:$4 sm:$0xff]  }
 0x3fe   : > { %v3130_v63 = vpop.eup %3129 }
 0x3ff   : > { %v1399_v0 = vmul.f32 %v3130_v63, %v3122_v49  ;;  %v3085_v63 = vld [vmem:[%s3706_s8 + $0x50] ss:$8 sps:$4 sm:$0xff]  }
 0x400   : > { %v1393_v2 = vpop.xlane.xlu0 %1392 }
 0x401   : > { %3133 = vrcp.f32 %v1393_v2  ;;  %v1403_v5 = vpack.c.bf16 %v1399_v0, %v1399_v0  ;;  %v3088_v0 = vld [vmem:[%s3706_s8 + $0x40] ss:$8 sps:$4 sm:$0xff]   ;;  %v3093_v2 = vld [vmem:[%s3706_s8 + $0x34] ss:$8 sps:$4 sm:$0xff]  }
 0x403   : > { %2846 = vmatmul.mubr.msk.bf16.vlgmr.msra.gmra.mxu1 %vm1357_vm3, %v1403_v5  ;;  %v3091_v5 = vld [vmem:[%s3706_s8 + $0x30] ss:$8 sps:$4 sm:$0xff]  }
 0x404   : > { %2856 = vmatpush3.bf16.msra.mxu1 %v1549_v52  ;;  %v1155_v6 = vpop.permute.xlu0 %1154  ;;  %2857 = vmatprep.mubr.msk.bf16.mxu1 %vm3384_vm0, %v3383_v4  ;;  %v3096_v52 = vld [vmem:[%s3706_s8 + $0x24] ss:$8 sps:$4 sm:$0xff]  }
 0x405   : > { %v1503_v7 = vsel %vm1409_vm2, %v1155_v6, 0  ;;  %1858 = vmatprep.subr.bf16.mxu1 %v3081_v56  ;;  %v3094_v6 = vld [vmem:[%s3706_s8 + $0x20] ss:$8 sps:$4 sm:$0xff]  }
 0x406   : > { %v3132_v8 = vpop.eup %3131  ;;  %2850 = vmatpush3.bf16.msra.mxu0 %v1503_v7  ;;  %v3099_v7 = vld [vmem:[%s3706_s8 + $0x14] ss:$8 sps:$4 sm:$0xff]  }
 0x407   : > { %v1400_v9 = vmul.f32 %v3132_v8, %v3124_v53  ;;  %2861 = vmatprep.subr.bf16.mxu0 %v3383_v4  ;;  %v3097_v8 = vld [vmem:[%s3706_s8 + $0x10] ss:$8 sps:$4 sm:$0xff]  }
 0x409   : > { %v1404_v10 = vpack.c.bf16 %v1400_v9, %v1400_v9  ;;  %v3102_v9 = vld [vmem:[%s3706_s8 + $0x4] ss:$8 sps:$4 sm:$0xff]  }
 0x40b   : > { %2852 = vmatmul.mubr.msk.bf16.vlgmr.msra.gmra.mxu0 %vm1357_vm3, %v1404_v10  ;;  %v3100_v10 = vld [vmem:[%s3706_s8] ss:$8 sps:$4 sm:$0xff]  }
 0x40c   : > { %2877 = vmatprep.mubr.msk.bf16.mxu0 %vm3384_vm0, %v3383_v4  ;;  %2862 = vmatpush3.bf16.msra.mxu0 %v3071_v14 }
 0x40d   : > { %2863 = vmatprep.subr.bf16.mxu0 %v3383_v4 }
 0x40e   : > { %v3134_v11 = vpop.eup %3133 }
 0x40f   : > { %v1401_v12 = vmul.f32 %v3134_v11, %v3126_v55  ;;  %v3079_v55 = vld [vmem:[%s3706_s8 + $0x70] ss:$8 sps:$4 sm:$0xff]  }
 0x410   : > { %2864 = vmatpush3.bf16.msra.mxu0 %v3072_v16 }
 0x411   : > { %v1405_v13 = vpack.c.bf16 %v1401_v12, %v1401_v12  ;;  %2865 = vmatprep.subr.bf16.mxu0 %v3383_v4 }
 0x413   : > { %2858 = vmatmul.mubr.msk.bf16.vlgmr.msra.gmra.mxu1 %vm1357_vm3, %v1405_v13 }
 0x414   : > { %1890 = vmatprep.mubr.bf16.mxu1 %v3382_v3  ;;  %2866 = vmatpush3.bf16.msra.mxu0 %v3073_v19  ;;  %v3074_v3 = vld [vmem:[%s3662_s25 + $0x20] sm:$0xff]  }
 0x415   : > { %2867 = vmatprep.subr.bf16.mxu0 %v3383_v4  ;;  %1859 = vmatpush1.bf16.msra.mxu1 %v3079_v55 }
 0x416   : > { %1860 = vmatprep.subr.bf16.mxu1 %v3084_v57 }
 0x418   : > { %2868 = vmatpush3.bf16.msra.mxu0 %v3074_v3  ;;  %v3103_v3 = vld [vmem:[%s4061_s7 + $0x78] sm:$0xff]  }
 0x419   : > { %2869 = vmatprep.subr.bf16.mxu0 %v3383_v4  ;;  %1861 = vmatpush1.bf16.msra.mxu1 %v3082_v58 }
 0x41a   : > { %1862 = vmatprep.subr.bf16.mxu1 %v3087_v62 }
 0x41c   : > { %2870 = vmatpush3.bf16.msra.mxu0 %v3075_v21  ;;  %v3104_v21 = vld [vmem:[%s4061_s7 + $0x38] sm:$0xff]  }
 0x41d   : > { %2871 = vmatprep.subr.bf16.mxu0 %v3383_v4  ;;  %1863 = vmatpush1.bf16.msra.mxu1 %v3085_v63 }
 0x41e   : > { %1864 = vmatprep.subr.bf16.mxu1 %v3090_v1 }
 0x420   : > { %2872 = vmatpush3.bf16.msra.mxu0 %v3076_v22  ;;  %v3105_v22 = vld [vmem:[%s4061_s7 + $0x70] sm:$0xff]  }
 0x421   : > { %2873 = vmatprep.subr.bf16.mxu0 %v3383_v4  ;;  %1865 = vmatpush1.bf16.msra.mxu1 %v3088_v0 }
 0x422   : > { %1866 = vmatprep.subr.bf16.mxu1 %v3093_v2 }
 0x424   : > { %2874 = vmatpush3.bf16.msra.mxu0 %v3077_v23  ;;  %v3106_v23 = vld [vmem:[%s4061_s7 + $0x30] sm:$0xff]  }
 0x425   : > { %2875 = vmatprep.subr.bf16.mxu0 %v3383_v4  ;;  %1867 = vmatpush1.bf16.msra.mxu1 %v3091_v5  ;;  %v2678_v5 = vld [vmem:[%s856_s9] ss:$0 sm:$0xff] }
 0x426   : > { %1868 = vmatprep.subr.bf16.mxu1 %v3096_v52 }
 0x428   : > { %2876 = vmatpush3.bf16.msra.mxu0 %v3078_v27  ;;  %v3109_v27 = vld [vmem:[%s4061_s7 + $0x60] sm:$0xff]  }
 0x429   : > { %1869 = vmatpush1.bf16.msra.mxu1 %v3094_v6  ;;  %2753 = vmatprep.subr.bf16.mxu0 %v3103_v3 }
 0x42a   : > { %1870 = vmatprep.subr.bf16.mxu1 %v3099_v7 }
 0x42d   : > { %1871 = vmatpush1.bf16.msra.mxu1 %v3097_v8 }
 0x42e   : > { %1872 = vmatprep.subr.bf16.mxu1 %v3102_v9 }
 0x431   : > { %1873 = vmatpush1.bf16.msra.mxu1 %v3100_v10 }
 0x45b   : > { %v1447_v15 = vpop.f32.mrf.mxu0 }
 0x45d   : > { %v2841_v17 = vpop.f32.mrf.mxu0 }
 0x45e   : > { %v2661_v17 = vld [vmem:[%s4065_s14] ss:$0 sm:$0xff] }
 0x45f   : > { %v1450_v18 = vpop.f32.mrf.mxu0 }
 0x461   : > { %v2842_v20 = vpop.f32.mrf.mxu0 }
 0x4c3   : > { %v1493_v25 = vpop.f32.mrf.mxu1 }
 0x4c4   : > { %1592 = vrot.lane.b32.xlu1 %v1493_v25, %s3387_s20  ;;  %v3107_v25 = vld [vmem:[%s4061_s7 + $0x68] sm:$0xff]  }
 0x4c5   : > { %v2847_v26 = vpop.f32.mrf.mxu1 }
 0x4c6   : > { %v3108_v26 = vld [vmem:[%s4061_s7 + $0x28] sm:$0xff]  }
 0x4c7   : > { %v1496_v28 = vpop.f32.mrf.mxu1 }
 0x4c8   : > { %v3110_v28 = vld [vmem:[%s4061_s7 + $0x20] sm:$0xff]  }
 0x4c9   : > { %v2848_v29 = vpop.f32.mrf.mxu1 }
 0x4ca   : > { %v3111_v29 = vld [vmem:[%s4061_s7 + $0x58] sm:$0xff]  }
 0x4cb   : > { %v1539_v33 = vpop.f32.mrf.mxu0 }
 0x4cc   : > { %1596 = vrot.lane.b32.xlu0 %v1539_v33, %s3385_s6  ;;  %v3112_v33 = vld [vmem:[%s4061_s7 + $0x18] sm:$0xff]  }
 0x4cd   : > { %v2853_v34 = vpop.f32.mrf.mxu0 }
 0x4ce   : > { %v3113_v34 = vld [vmem:[%s4061_s7 + $0x50] sm:$0xff]  }
 0x4cf   : > { %v1542_v35 = vpop.f32.mrf.mxu0 }
 0x4d0   : > { %v3114_v35 = vld [vmem:[%s4061_s7 + $0x10] sm:$0xff]  }
 0x4d1   : > { %v2854_v36 = vpop.f32.mrf.mxu0 }
 0x4d2   : > { %v3115_v36 = vld [vmem:[%s4061_s7 + $0x48] sm:$0xff]  }
 0x4d3   : > { %v1585_v37 = vpop.f32.mrf.mxu1 }
 0x4d4   : > { %1600 = vrot.lane.b32.xlu1 %v1585_v37, %s3386_s10  ;;  %v3116_v37 = vld [vmem:[%s4061_s7 + $0x8] sm:$0xff]  }
 0x4d5   : > { %v2859_v38 = vpop.f32.mrf.mxu1 }
 0x4d6   : > { %v3117_v38 = vld [vmem:[%s4061_s7 + $0x40] sm:$0xff]  }
 0x4d7   : > { %v1588_v39 = vpop.f32.mrf.mxu1 }
 0x4d8   : > { %v3118_v39 = vld [vmem:[%s4061_s7] sm:$0xff]  }
 0x4d9   : > { %v2860_v40 = vpop.f32.mrf.mxu1 }
 0x4da   : > { %v1766_v40 = vld [vmem:[%s3711_s4] sm:$0x3] }
 0x536   : > { %v1593_v41 = vpop.permute.xlu1 %1592 }
 0x537   : > { %v1603_v42 = vsel %vm1160_vm1, %v1447_v15, %v1593_v41  ;;  %v2660_v15 = vld [vmem:[%s4063_s11] ss:$0 sm:$0xff]  ;;  %v1771_v41 = vrot.slane %v1766_v40, %v3780_v32 }
 0x53e   : > { %v1597_v4 = vpop.permute.xlu0 %1596 }
 0x53f   : > { %v1605_v43 = vsel %vm1604_vm4, %v1603_v42, %v1597_v4  ;;  %v1775_v4 = vrot.slane %v1766_v40, %v916_v31 }
 0x546   : > { %v1601_v44 = vpop.permute.xlu1 %1600 }
 0x547   : > { %v1607_v45 = vsel %vm1606_vm5, %v1605_v43, %v1601_v44 }
 0x548   : > { %v1608_v46 = vpack.c.bf16 %v1607_v45, %v1607_v45 }
 0x54a   : > { %2878 = vmatmul.mubr.bf16.vlgmr.msra.gmra.mxu0 %v1608_v46 }
 0x54b   : > { %2754 = vmatpush3.bf16.msra.mxu0 %v3104_v21 }
 0x54c   : > { %2755 = vmatprep.subr.bf16.mxu0 %v3105_v22 }
 0x54f   : > { %2756 = vmatpush3.bf16.msra.mxu0 %v3106_v23 }
 0x550   : > { %2757 = vmatprep.subr.bf16.mxu0 %v3107_v25 }
 0x553   : > { %2758 = vmatpush3.bf16.msra.mxu0 %v3108_v26 }
 0x554   : > { %2759 = vmatprep.subr.bf16.mxu0 %v3109_v27 }
 0x557   : > { %2760 = vmatpush3.bf16.msra.mxu0 %v3110_v28 }
 0x558   : > { %2761 = vmatprep.subr.bf16.mxu0 %v3111_v29 }
 0x55b   : > { %2762 = vmatpush3.bf16.msra.mxu0 %v3112_v33 }
 0x55c   : > { %2763 = vmatprep.subr.bf16.mxu0 %v3113_v34 }
 0x55f   : > { %2764 = vmatpush3.bf16.msra.mxu0 %v3114_v35 }
 0x560   : > { %2765 = vmatprep.subr.bf16.mxu0 %v3115_v36 }
 0x563   : > { %2766 = vmatpush3.bf16.msra.mxu0 %v3116_v37 }
 0x564   : > { %2767 = vmatprep.subr.bf16.mxu0 %v3117_v38 }
 0x567   : > { %2768 = vmatpush3.bf16.msra.mxu0 %v3118_v39 }
 0x60a   : > { %v1714_v48 = vpop.f32.mrf.mxu0 }
 0x60b   : > { %v1715_v49 = vadd.f32 %v2651_v47, %v1714_v48 }
 0x60c   : > { %v2879_v50 = vpop.f32.mrf.mxu0 }
 0x60d   : > { %v1720_v51 = vadd.f32 %v1715_v49, %v3757_v24 }
 0x60e   : > { %v1717_v53 = vpop.f32.mrf.mxu0 }
 0x60f   : > { %1723 = vadd.xlane.f32.xlu0 %v1720_v51 }
 0x610   : > { %v2880_v54 = vpop.f32.mrf.mxu0 }
 0x698   : > { %v1724_v59 = vpop.xlane.xlu0 %1723 }
 0x699   : > { %v1726_v24 = vmul.f32 0.0078125, %v1724_v59 }
 0x69b   : > { %v1727_v60 = vsub.f32 %v1720_v51, %v1726_v24 }
 0x69d   : > { %v1728_v61 = vmul.f32 %v1727_v60, %v1727_v60 }
 0x69f   : > { %1729 = vadd.xlane.f32.xlu1 %v1728_v61 }
 0x728   : > { %v1730_v11 = vpop.xlane.xlu1 %1729 }
 0x729   : > { %v1731_v12 = vmul.f32 0.0078125, %v1730_v11 }
 0x72b   : > { %v1732_v13 = vadd.f32 1e-12, %v1731_v12 }
 0x72d   : > { %3135 = vrsqrt.f32 %v1732_v13 }
 0x73a   : > { %v3136_v14 = vpop.eup %3135 }
 0x73b   : > { %v1734_v16 = vmul.f32 %v3136_v14, %v1727_v60 }
 0x73d   : > { %v1741_v18 = vmul.f32 %v2660_v15, %v1734_v16 }
 0x73f   : > { %v3903_v19 = vadd.f32 %v2661_v17, %v1741_v18 }
 0x741   : > { %v1749_v20 = vpack.c.bf16 %v3903_v19, %v3903_v19 }
 0x743   : > { %1891 = vmatmul.mubr.bf16.vlgmr.msra.gmra.mxu1 %v1749_v20  ;;  %v2695_v20 = vld [vmem:[%s859_s15] ss:$0 sm:$0xff] }
 0x803   : > { %v1892_v42 = vpop.f32.mrf.mxu1 }
 0x804   : > { %v1893_v43 = vadd.f32 %v1892_v42, %v1771_v41 }
 0x805   : > { %v1894_v44 = vpop.f32.mrf.mxu1 }
 0x806   : > { %v1899_v45 = vmul.f32 %v1893_v43, %v1893_v43  ;;  %v1895_v46 = vadd.f32 %v1894_v44, %v1775_v4 }
 0x807   : > { %v1896_v47 = vpop.f32.mrf.mxu1 }
 0x808   : > { %v1901_v48 = vmul.f32 %v1899_v45, %v1893_v43  ;;  %v1900_v49 = vmul.f32 %v1895_v46, %v1895_v46 }
 0x809   : > { %v1897_v50 = vpop.f32.mrf.mxu1 }
 0x80a   : > { %v1903_v51 = vmul.f32 0.044715, %v1901_v48  ;;  %v1902_v53 = vmul.f32 %v1900_v49, %v1895_v46 }
 0x80c   : > { %v1905_v54 = vadd.f32 %v1903_v51, %v1893_v43  ;;  %v1904_v55 = vmul.f32 0.044715, %v1902_v53 }
 0x80e   : > { %v1907_v56 = vmul.f32 0.7978846, %v1905_v54  ;;  %v1906_v57 = vadd.f32 %v1904_v55, %v1895_v46 }
 0x810   : > { %3137 = vtanh.f32 %v1907_v56  ;;  %v1908_v58 = vmul.f32 0.7978846, %v1906_v57 }
 0x812   : > { %3139 = vtanh.f32 %v1908_v58 }
 0x81d   : > { %v3138_v30 = vpop.eup %3137 }
 0x81e   : > { %v1911_v31 = vadd.f32 1.0, %v3138_v30 }
 0x81f   : > { %v3140_v59 = vpop.eup %3139 }
 0x820   : > { %v1912_v24 = vadd.f32 1.0, %v3140_v59  ;;  %v1913_v60 = vmul.f32 0.5, %v1911_v31 }
 0x822   : > { %v1914_v61 = vmul.f32 0.5, %v1912_v24  ;;  %v1915_v62 = vmul.f32 %v1913_v60, %v1893_v43 }
 0x824   : > { %v1916_v63 = vmul.f32 %v1914_v61, %v1895_v46  ;;  %v1917_v1 = vpack.c.bf16 %v1915_v62, %v1915_v62 }
 0x826   : > { %v1918_v0 = vpack.c.bf16 %v1916_v63, %v1916_v63 }
 0x828   : > { %2086 = vmatprep.mubr.bf16.mxu0 %v1918_v0 }
 0x829   : > { %2087 = vmatmul.mubr.bf16.vlgmr.msra.gmra.mxu0 %v1917_v1 }
 0x8e9   : > { %v2769_v2 = vpop.f32.mrf.mxu0 }
 0x8eb   : > { %v2770_v52 = vpop.f32.mrf.mxu0 }
 0x8ec   : > { %v2771_v6 = vadd.f32 %v2770_v52, %v2769_v2 }
 0x8ed   : > { %v2772_v7 = vpop.f32.mrf.mxu0 }
 0x8ee   : > { %v2089_v8 = vadd.f32 %v2771_v6, %v2678_v5 }
 0x8ef   : > { %v2773_v9 = vpop.f32.mrf.mxu0 }
 0x8f0   : > { %v2094_v10 = vadd.f32 %v2089_v8, %v3903_v19  ;;  %v2696_v19 = vld [vmem:[%s862_s26] ss:$0 sm:$0xff] }
 0x8f2   : > { %2097 = vadd.xlane.f32.xlu0 %v2094_v10 }
 0x97b   : > { %v2098_v11 = vpop.xlane.xlu0 %2097 }
 0x97c   : > { %v2099_v12 = vmul.f32 0.0078125, %v2098_v11 }
 0x97e   : > { %v2100_v13 = vsub.f32 %v2094_v10, %v2099_v12 }
 0x980   : > { %v2101_v14 = vmul.f32 %v2100_v13, %v2100_v13 }
 0x982   : > { %2102 = vadd.xlane.f32.xlu0 %v2101_v14 }
 0xa0b   : > { %v2103_v15 = vpop.xlane.xlu0 %2102 }
 0xa0c   : > { %v2104_v16 = vmul.f32 0.0078125, %v2103_v15 }
 0xa0e   : > { %v2105_v17 = vadd.f32 1e-12, %v2104_v16 }
 0xa10   : > { %3141 = vrsqrt.f32 %v2105_v17 }
 0xa1d   : > { %v3142_v18 = vpop.eup %3141 }
 0xa1e   : > { %v2107_v3 = vmul.f32 %v3142_v18, %v2100_v13 }
 0xa20   : > { %v2114_v21 = vmul.f32 %v2695_v20, %v2107_v3  ;;  %2126 = sbr.rel (%p2697_p6) target bundleno = 3056 (0xbf0), region = 120 }
 0xa22   : > { %v2121_v22 = vadd.f32 %v2696_v19, %v2114_v21 }
 0xa24   : > { %2122 = vst [vmem:[#allocation2] sm:$0xff] %v2121_v22 }
 0xa25   : > { %v3143_v23 = vld [vmem:[#allocation8 + $0x38] sm:$0xff]   ;;  %v3388_v25 = vmov 0.0   ;;  %v3144_v26 = vld [vmem:[#allocation8 + $0x30] sm:$0xff]   ;;  %vm3389_vm6 = vmmov 0   ;;  %v3145_v27 = vld [vmem:[#allocation8 + $0x28] sm:$0xff]   ;;  %v2127_v36 = vpack.c.bf16 %v2121_v22, %v2121_v22 }
 0xa26   : > { %2881 = vmatprep.subr.bf16.mxu0 %v3388_v25  ;;  %2901 = vmatprep.subr.bf16.mxu1 %v3388_v25  ;;  %v3146_v28 = vld [vmem:[#allocation8 + $0x20] sm:$0xff]   ;;  %v3147_v29 = vld [vmem:[#allocation8 + $0x18] sm:$0xff]   ;;  %v3148_v33 = vld [vmem:[#allocation8 + $0x10] sm:$0xff]  }
 0xa27   : > { %2882 = vmatpush3.bf16.msra.mxu0 %v3143_v23  ;;  %2897 = vmatprep.mubr.msk.bf16.mxu0 %vm3389_vm6, %v3388_v25  ;;  %v3149_v34 = vld [vmem:[#allocation8 + $0x8] sm:$0xff]   ;;  %v3150_v35 = vld [vmem:[#allocation8] sm:$0xff]   ;;  %v3151_v37 = vld [vmem:[#allocation10 + $0x38] sm:$0xff]  }
 0xa28   : > { %2883 = vmatprep.subr.bf16.mxu0 %v3388_v25  ;;  %2917 = vmatprep.mubr.msk.bf16.mxu1 %vm3389_vm6, %v3388_v25  ;;  %v3152_v38 = vld [vmem:[#allocation10 + $0x30] sm:$0xff]   ;;  %v3153_v39 = vld [vmem:[#allocation10 + $0x28] sm:$0xff]   ;;  %v3154_v40 = vld [vmem:[#allocation10 + $0x20] sm:$0xff]  }
 0xa29   : > { %2902 = vmatpush3.bf16.msra.mxu1 %v3151_v37  ;;  %v3155_v41 = vld [vmem:[#allocation10 + $0x18] sm:$0xff]   ;;  %v3156_v4 = vld [vmem:[#allocation10 + $0x10] sm:$0xff]   ;;  %v3157_v42 = vld [vmem:[#allocation10 + $0x8] sm:$0xff]  }
 0xa2a   : > { %2903 = vmatprep.subr.bf16.mxu1 %v3388_v25  ;;  %v3158_v43 = vld [vmem:[#allocation10] sm:$0xff]   ;;  %v2144_v44 = vld [vmem:[%s4069_s17] sm:$0x1] }
 0xa2b   : > { %2884 = vmatpush3.bf16.msra.mxu0 %v3144_v26  ;;  %v2259_v59 = vld [vmem:[%s4070_s2] sm:$0x1] }
 0xa2c   : > { %2885 = vmatprep.subr.bf16.mxu0 %v3388_v25 }
 0xa2d   : > { %2904 = vmatpush3.bf16.msra.mxu1 %v3152_v38 }
 0xa2e   : > { %2905 = vmatprep.subr.bf16.mxu1 %v3388_v25 }
 0xa2f   : > { %2886 = vmatpush3.bf16.msra.mxu0 %v3145_v27 }
 0xa30   : > { %2887 = vmatprep.subr.bf16.mxu0 %v3388_v25 }
 0xa31   : > { %2906 = vmatpush3.bf16.msra.mxu1 %v3153_v39 }
 0xa32   : > { %2907 = vmatprep.subr.bf16.mxu1 %v3388_v25 }
 0xa33   : > { %2888 = vmatpush3.bf16.msra.mxu0 %v3146_v28 }
 0xa34   : > { %2889 = vmatprep.subr.bf16.mxu0 %v3388_v25 }
 0xa35   : > { %2908 = vmatpush3.bf16.msra.mxu1 %v3154_v40 }
 0xa36   : > { %2909 = vmatprep.subr.bf16.mxu1 %v3388_v25 }
 0xa37   : > { %2890 = vmatpush3.bf16.msra.mxu0 %v3147_v29 }
 0xa38   : > { %2891 = vmatprep.subr.bf16.mxu0 %v3388_v25 }
 0xa39   : > { %2910 = vmatpush3.bf16.msra.mxu1 %v3155_v41 }
 0xa3a   : > { %2911 = vmatprep.subr.bf16.mxu1 %v3388_v25 }
 0xa3b   : > { %2892 = vmatpush3.bf16.msra.mxu0 %v3148_v33 }
 0xa3c   : > { %2893 = vmatprep.subr.bf16.mxu0 %v3388_v25 }
 0xa3d   : > { %2912 = vmatpush3.bf16.msra.mxu1 %v3156_v4 }
 0xa3e   : > { %2913 = vmatprep.subr.bf16.mxu1 %v3388_v25 }
 0xa3f   : > { %2894 = vmatpush3.bf16.msra.mxu0 %v3149_v34 }
 0xa40   : > { %2895 = vmatprep.subr.bf16.mxu0 %v3388_v25 }
 0xa41   : > { %2914 = vmatpush3.bf16.msra.mxu1 %v3157_v42 }
 0xa42   : > { %2915 = vmatprep.subr.bf16.mxu1 %v3388_v25 }
 0xa43   : > { %2896 = vmatpush3.bf16.msra.mxu0 %v3150_v35 }
 0xa45   : > { %2916 = vmatpush3.bf16.msra.mxu1 %v3158_v43 }
 0xa46   : > { %2898 = vmatmul.mubr.bf16.vlgmr.msra.gmra.mxu0 %v2127_v36 }
 0xb06   : > { %v2227_v45 = vpop.f32.mrf.mxu0 }
 0xb07   : > { %v2228_v46 = vadd.f32 %v2227_v45, %v2144_v44 }
 0xb08   : > { %v2899_v47 = vpop.f32.mrf.mxu0 }
 0xb09   : > { %v2233_v48 = vmul.f32 %v2228_v46, %v2228_v46 }
 0xb0a   : > { %v2230_v49 = vpop.f32.mrf.mxu0 }
 0xb0b   : > { %v2234_v50 = vmul.f32 %v2233_v48, %v2228_v46 }
 0xb0c   : > { %v2900_v51 = vpop.f32.mrf.mxu0 }
 0xb0d   : > { %v2235_v53 = vmul.f32 0.044715, %v2234_v50 }
 0xb0f   : > { %v2236_v54 = vadd.f32 %v2235_v53, %v2228_v46 }
 0xb11   : > { %v2237_v55 = vmul.f32 0.7978846, %v2236_v54 }
 0xb13   : > { %3159 = vtanh.f32 %v2237_v55 }
 0xb20   : > { %v3160_v56 = vpop.eup %3159 }
 0xb21   : > { %v2239_v57 = vadd.f32 1.0, %v3160_v56 }
 0xb23   : > { %v2240_v58 = vmul.f32 0.5, %v2239_v57 }
 0xb25   : > { %v2241_v30 = vmul.f32 %v2240_v58, %v2228_v46 }
 0xb27   : > { %v2242_v31 = vpack.c.bf16 %v2241_v30, %v2241_v30 }
 0xb29   : > { %2918 = vmatmul.mubr.bf16.vlgmr.msra.gmra.mxu1 %v2242_v31 }
 0xbe9   : > { %v2342_v24 = vpop.f32.mrf.mxu1 }
 0xbea   : > { %v2343_v60 = vadd.f32 %v2342_v24, %v2259_v59 }
 0xbeb   : > { %v2919_v61 = vpop.f32.mrf.mxu1 }
 0xbec   : > { %v2351_v62 = vrot.slane %v2343_v60, %v3780_v32 }
 0xbed   : > { %v2345_v63 = vpop.f32.mrf.mxu1 }
 0xbee   : > { %2352 = vst [vmem:[%s3728_s27] sm:$0xff] %v2351_v62 }
 0xbef   : > { %v2920_v0 = vpop.f32.mrf.mxu1 }
 0xbf0 PF: > { %s4071_s1 = sld [smem:[#allocation18_spill]] }
 0xbf1   : > { %s4072_s27 = sld [smem:[#allocation14_spill]] }
 0xbf2   : > { %s4073_s28 = sld [smem:[#allocation15_spill]] }
 0xbf3   : > { %s4074_s29 = sld [smem:[#allocation21_spill]] }
 0xbf4   : > { %s4075_s30 = sld [smem:[#allocation16_spill]] }
 0xbf5   : > { %s4076_s0 = sld [smem:[#allocation17_spill]] }
 0xbf6   : > { %s35_s20 = sadd.s32 1, %s4071_s1   ;;  %s4077_s19 = sld [smem:[#allocation19_spill]] }
 0xbf7   : > { %p32_p4 = scmp.ge.s32.totalorder %s35_s20, 6   ;;  %s4078_s1 = sld [smem:[#allocation20_spill]] }
 0xbf9   :  { %34 = sbr.rel (!%p32_p4) target bundleno = 27 (0x1b), region = 203 }
 0xbfe   :  { %2372 = vsyncpa [#allocation4], 1 }
 0xbff   :  { %2374 = vsyncpa [#allocation4 + $0x1], 1 }
 0xc00   :  { %2375 = vsyncpa [#allocation6], 1 }
 0xc01   :  { %2377 = vsyncpa [#allocation6 + $0x1], 1 }
 0xc02   :  { %2378 = vsyncpa [#allocation9], 1 }

</bundles_post_ra>
